<compile_context>
chip_gen: v7x
topology: tpu7x:2x2x1
jax: 0.10.0
libtpu: 0.0.40
codegen_flags: <defaults>
</compile_context>

<pallas_src>
import functools
import re

import jax
import jax.numpy as jnp
import numpy as np
from jax.experimental import pallas as pl
from jax.experimental.pallas import tpu as pltpu


def _gelu_erf(x):
    """Exact-erf GELU via Abramowitz & Stegun 7.1.26 (|erf err| < 2e-7).

    Avoids relying on an erf lowering inside Mosaic; uses only VPU/EUP-native
    ops (mul/add/abs/where/div/exp).  Matches torch.nn.GELU() (exact) to well
    below bf16 precision.  Works in the dtype of `x` (f32 or bf16).
    """
    z = x * 0.7071067811865476            # x / sqrt(2)
    az = jnp.abs(z)
    t = 1.0 / (1.0 + 0.3275911 * az)
    poly = t * (0.254829592 + t * (-0.284496736 + t * (1.421413741
               + t * (-1.453152027 + t * 1.061405429))))
    erf_abs = 1.0 - poly * jnp.exp(-az * az)
    erf_z = jnp.where(z >= 0, erf_abs, -erf_abs)
    return 0.5 * x * (1.0 + erf_z)


def block_kernel(x_ref,
                 g1_ref, be1_ref,
                 wqkv_ref, bqkv_ref,
                 wproj_ref, bproj_ref,
                 g2_ref, be2_ref,
                 w1_ref, b1_ref,
                 w2_ref, b2_ref,
                 o_ref,
                 *, n_heads, head_dim, eps, ew_dtype, h_chunk):
    dim = n_heads * head_dim
    bb, tt, _ = x_ref.shape
    n = bb * tt                      # rows of the flattened (samples*tokens, D) slab
    hidden = w1_ref.shape[1]

    # ---- Hoist small / attention parameter reads (each read exactly once) ---
    g1, be1 = g1_ref[0], be1_ref[0]
    wqkv = wqkv_ref[...]             # bf16 (D, 3D); q-columns pre-scaled by hd**-0.5
    bqkv = bqkv_ref[0]               # f32  (3D,);   q-part pre-scaled
    wproj = wproj_ref[...]           # bf16 (D, D)
    bproj = bproj_ref[0]
    g2, be2 = g2_ref[0], be2_ref[0]
    b2 = b2_ref[0]
    # w1 / b1 / w2 are read per hidden-chunk inside the MLP loop (smaller live set).

    # Flatten (Bb, T, D) -> (Bb*T, D).  The wrapper forces Bb == 1 whenever
    # T % 8 != 0, so this collapse never crosses a sublane tile boundary.
    x = x_ref[...].astype(jnp.float32).reshape(n, dim)

    # ---- LayerNorm 1 (f32 statistics) ---------------------------------------
    mu = jnp.mean(x, axis=-1, keepdims=True)
    var = jnp.mean((x - mu) * (x - mu), axis=-1, keepdims=True)
    xn = (x - mu) * jax.lax.rsqrt(var + eps)
    xn = xn * g1 + be1

    # ---- QKV projection: one (N, D) @ (D, 3D) bf16 MXU matmul ---------------
    qkv = jnp.dot(xn.astype(jnp.bfloat16), wqkv,
                  preferred_element_type=jnp.float32) + bqkv        # (N, 3D)

    # ---- Multi-head attention -----------------------------------------------
    # Per head: sample-batched einsums (single-batch-dim pattern); the head
    # contexts are concatenated once so the output projection is ONE dense
    # (N, D) @ (D, D) matmul with K = D instead of n_heads K=head_dim matmuls.
    ctx_heads = []
    for h in range(n_heads):
        lo = h * head_dim
        q = qkv[:, lo:lo + head_dim].reshape(bb, tt, head_dim).astype(jnp.bfloat16)
        k = qkv[:, dim + lo:dim + lo + head_dim].reshape(bb, tt, head_dim).astype(jnp.bfloat16)
        v = qkv[:, 2 * dim + lo:2 * dim + lo + head_dim].reshape(bb, tt, head_dim).astype(jnp.bfloat16)

        s = jnp.einsum("bqd,bkd->bqk", q, k,
                       preferred_element_type=jnp.float32)           # (Bb, T, T)
        s = s - jnp.max(s, axis=-1, keepdims=True)
        e = jnp.exp(s)
        p = e * pl.reciprocal(jnp.sum(e, axis=-1, keepdims=True), approx=True)

        ctx = jnp.einsum("bqk,bkd->bqd", p.astype(jnp.bfloat16), v,
                         preferred_element_type=jnp.float32)         # (Bb, T, hd)
        ctx_heads.append(ctx.reshape(n, head_dim))

    ctx_all = jnp.concatenate(ctx_heads, axis=-1)                    # (N, D) head-concat
    attn = jnp.dot(ctx_all.astype(jnp.bfloat16), wproj,
                   preferred_element_type=jnp.float32) + bproj

    x1 = x + attn                    # residual 1 (f32)

    # ---- LayerNorm 2 ---------------------------------------------------------
    mu2 = jnp.mean(x1, axis=-1, keepdims=True)
    var2 = jnp.mean((x1 - mu2) * (x1 - mu2), axis=-1, keepdims=True)
    x2n = (x1 - mu2) * jax.lax.rsqrt(var2 + eps)
    x2n = (x2n * g2 + be2).astype(jnp.bfloat16)

    # ---- MLP, tiled over the hidden dim --------------------------------------
    mlp_out = None
    for c0 in range(0, hidden, h_chunk):
        c1 = min(c0 + h_chunk, hidden)
        hcol = jnp.dot(x2n, w1_ref[:, c0:c1],
                       preferred_element_type=jnp.float32)           # (N, hc) f32 acc
        hcol = hcol.astype(ew_dtype) + b1_ref[0, c0:c1].astype(ew_dtype)
        hcol = _gelu_erf(hcol)                                       # bf16 on v6e/v7x
        part = jnp.dot(hcol.astype(jnp.bfloat16), w2_ref[c0:c1, :],
                       preferred_element_type=jnp.float32)           # (N, D)
        mlp_out = part if mlp_out is None else mlp_out + part
    mlp_out = mlp_out + b2

    y = x1 + mlp_out                 # residual 2
    o_ref[...] = y.reshape(bb, tt, dim).astype(o_ref.dtype)


def _tpu_generation():
    """Best-effort TPU generation (4/5/6/7); 0 if unknown."""
    try:
        kind = jax.devices()[0].device_kind.lower()
    except Exception:
        return 0
    m = re.search(r"(\d+)", kind)
    return int(m.group(1)) if m else 0


def _pick_block_b(batch, tokens, target_rows, ensure_two_steps):
    """Largest divisor of `batch` with block_b * tokens ~ target_rows.

    Forces block_b == 1 when tokens is not sublane(8)-aligned so the in-kernel
    flatten is a free leading-dim collapse; caps block_b at batch // 2 on
    2-TensorCore chips (v7x) so the 'parallel' grid axis has >= 2 steps.
    """
    if tokens % 8 != 0:
        bb = 1
    else:
        bb = max(1, min(batch, max(1, target_rows // max(tokens, 1))))
    if ensure_two_steps and batch >= 2:
        bb = min(bb, batch // 2)
    bb = max(1, bb)
    while batch % bb:
        bb -= 1
    return bb


def block_forward(x, params, *, n_heads, block_b=None):
    B, T, D = x.shape
    head_dim = D // n_heads
    H = params["w1"].shape[1]
    gen = _tpu_generation()

    # Generation-conditional tuning (v5e/v6e: 128 MiB VMEM; v7x: 64 MiB, 2 TCs).
    if gen >= 7:
        vmem_limit, target_rows, ew_dtype = 48 << 20, 256, jnp.bfloat16
        single_buffer_weights, two_core = True, True
    elif gen == 6:
        vmem_limit, target_rows, ew_dtype = 96 << 20, 512, jnp.bfloat16
        single_buffer_weights, two_core = False, False
    elif gen in (4, 5):
        vmem_limit, target_rows, ew_dtype = 96 << 20, 512, jnp.float32
        single_buffer_weights, two_core = False, False
    else:  # unknown -> conservative
        vmem_limit, target_rows, ew_dtype = 48 << 20, 256, jnp.float32
        single_buffer_weights, two_core = False, False

    if block_b is None:
        block_b = _pick_block_b(B, T, target_rows, two_core)

    # Fold the attention scale into the q-columns of the QKV projection
    # (free at runtime; exact when head_dim is a power of 4).
    scale = head_dim ** (-0.5)
    qscale = jnp.concatenate([jnp.full((D,), scale, jnp.float32),
                              jnp.ones((2 * D,), jnp.float32)])
    wqkv = (params["wqkv"] * qscale).astype(jnp.bfloat16)
    bqkv = params["bqkv"] * qscale
    # bf16 weight matrices: half the VMEM footprint, ~4x MXU throughput on v6e/v7x.
    wproj = params["wproj"].astype(jnp.bfloat16)
    w1 = params["w1"].astype(jnp.bfloat16)
    w2 = params["w2"].astype(jnp.bfloat16)

    kernel = functools.partial(
        block_kernel, n_heads=n_heads, head_dim=head_dim, eps=1e-6,
        ew_dtype=ew_dtype, h_chunk=min(H, 1024))

    # Constant-index weight blocks: on v7x single-buffer the big matrices so the
    # (useless) second pipeline buffer does not eat the 64 MiB VMEM budget.
    w_kwargs = {}
    if single_buffer_weights and hasattr(pl, "Buffered"):
        w_kwargs = dict(pipeline_mode=pl.Buffered(1))

    def wspec(shape):               # big weight matrices
        nd = len(shape)
        return pl.BlockSpec(shape, lambda b, _n=nd: (0,) * _n, **w_kwargs)

    def cspec(shape):               # small constants (biases / LN params)
        nd = len(shape)
        return pl.BlockSpec(shape, lambda b, _n=nd: (0,) * _n)

    cost = pl.CostEstimate(
        flops=int(2 * B * T * D * (4 * D + 2 * H + 2 * T)),
        transcendentals=int(B * T * (n_heads * T + H)),
        bytes_accessed=int(8 * B * T * D
                           + 2 * (wqkv.size + wproj.size + w1.size + w2.size)))

    return pl.pallas_call(
        kernel,
        out_shape=jax.ShapeDtypeStruct((B, T, D), x.dtype),
        grid_spec=pltpu.PrefetchScalarGridSpec(
            num_scalar_prefetch=0,
            grid=(B // block_b,),
            in_specs=[
                pl.BlockSpec((block_b, T, D), lambda b: (b, 0, 0)),  # x
                cspec((1, D)), cspec((1, D)),                  # ln1 gamma, beta
                wspec((D, 3 * D)), cspec((1, 3 * D)),          # qkv W, b (q pre-scaled)
                wspec((D, D)), cspec((1, D)),                  # proj W, b
                cspec((1, D)), cspec((1, D)),                  # ln2 gamma, beta
                wspec((D, H)), cspec((1, H)),                  # fc1 W, b
                wspec((H, D)), cspec((1, D)),                  # fc2 W, b
            ],
            out_specs=pl.BlockSpec((block_b, T, D), lambda b: (b, 0, 0)),
        ),
        compiler_params=pltpu.CompilerParams(
            dimension_semantics=("parallel",),
            vmem_limit_bytes=vmem_limit),
        cost_estimate=cost,
    )(x,
      params["g1"], params["be1"],
      wqkv, bqkv,
      wproj, params["bproj"],
      params["g2"], params["be2"],
      w1, params["b1"],
      w2, params["b2"])


def block_reference(x, params, *, n_heads):
    """Pure-JAX f32 reference mirroring the PyTorch Block forward."""
    B, T, D = x.shape
    hd = D // n_heads
    eps = 1e-6

    def ln(v, g, b):
        mu = jnp.mean(v, axis=-1, keepdims=True)
        var = jnp.mean((v - mu) ** 2, axis=-1, keepdims=True)
        return (v - mu) / jnp.sqrt(var + eps) * g + b

    xn = ln(x, params["g1"][0], params["be1"][0])
    qkv = xn @ params["wqkv"] + params["bqkv"][0]
    qkv = qkv.reshape(B, T, 3, n_heads, hd).transpose(2, 0, 3, 1, 4)
    q, k, v = qkv[0], qkv[1], qkv[2]
    dp = jnp.einsum("bhqd,bhkd->bhqk", q, k) * (hd ** -0.5)
    attn = jax.nn.softmax(dp, axis=-1)
    wav = jnp.einsum("bhqk,bhkd->bhqd", attn, v)
    wav = wav.transpose(0, 2, 1, 3).reshape(B, T, D)
    x1 = x + (wav @ params["wproj"] + params["bproj"][0])

    x2n = ln(x1, params["g2"][0], params["be2"][0])
    h = jax.nn.gelu(x2n @ params["w1"] + params["b1"][0], approximate=False)
    return x1 + (h @ params["w2"] + params["b2"][0])


def init_params(key, dim, n_heads, mlp_ratio=4.0):
    hidden = int(dim * mlp_ratio)
    keys = jax.random.split(key, 8)
    s = 0.02
    return {
        "g1": jnp.ones((1, dim), jnp.float32),
        "be1": jnp.zeros((1, dim), jnp.float32),
        # stored already transposed: (in, out)
        "wqkv": s * jax.random.normal(keys[0], (dim, 3 * dim), jnp.float32),
        "bqkv": s * jax.random.normal(keys[1], (1, 3 * dim), jnp.float32),
        "wproj": s * jax.random.normal(keys[2], (dim, dim), jnp.float32),
        "bproj": s * jax.random.normal(keys[3], (1, dim), jnp.float32),
        "g2": jnp.ones((1, dim), jnp.float32),
        "be2": jnp.zeros((1, dim), jnp.float32),
        "w1": s * jax.random.normal(keys[4], (dim, hidden), jnp.float32),
        "b1": s * jax.random.normal(keys[5], (1, hidden), jnp.float32),
        "w2": s * jax.random.normal(keys[6], (hidden, dim), jnp.float32),
        "b2": s * jax.random.normal(keys[7], (1, dim), jnp.float32),
    }


if __name__ == "__main__":
    B, T, D = 2, 8, 64      # n_samples, n_patches + 1, dim
    n_heads = 4             # head_dim = 16

    root = jax.random.PRNGKey(0)
    k_x, k_p = jax.random.split(root)
    x = jax.random.normal(k_x, (B, T, D), jnp.float32)
    params = init_params(k_p, D, n_heads)

    out = jax.block_until_ready(block_forward(x, params, n_heads=n_heads))

    ref = block_reference(x, params, n_heads=n_heads)
    # bf16 matmul operands (and approx softmax reciprocal) vs f32 reference.
    np.testing.assert_allclose(np.asarray(out), np.asarray(ref),
                               rtol=2e-2, atol=2e-2)
    print("KERNEL_OK")
</pallas_src>

<mosaic_0001>
module attributes {stable_mosaic.version = 11 : i64} {
  func.func @block_kernel(%arg0: i32, %arg1: memref<2x8x64xf32, #tpu.memory_space<vmem>>, %arg2: memref<1x64xf32, #tpu.memory_space<vmem>>, %arg3: memref<1x64xf32, #tpu.memory_space<vmem>>, %arg4: memref<64x192xbf16, #tpu.memory_space<vmem>>, %arg5: memref<1x192xf32, #tpu.memory_space<vmem>>, %arg6: memref<64x64xbf16, #tpu.memory_space<vmem>>, %arg7: memref<1x64xf32, #tpu.memory_space<vmem>>, %arg8: memref<1x64xf32, #tpu.memory_space<vmem>>, %arg9: memref<1x64xf32, #tpu.memory_space<vmem>>, %arg10: memref<64x256xbf16, #tpu.memory_space<vmem>>, %arg11: memref<1x256xf32, #tpu.memory_space<vmem>>, %arg12: memref<256x64xbf16, #tpu.memory_space<vmem>>, %arg13: memref<1x64xf32, #tpu.memory_space<vmem>>, %arg14: memref<2x8x64xf32, #tpu.memory_space<vmem>>) attributes {dimension_semantics = [#tpu.dimension_semantics<parallel>], iteration_bounds = array<i64: 1>, scalar_prefetch = 0 : i64, scratch_operands = 0 : i64, tpu.core_type = #tpu.core_type<tc>, window_params = [{transform_indices = @transform_0, window_bounds = array<i64: 2, 8, 64>}, {pipeline_mode = #tpu.pipeline_mode<synchronous>, transform_indices = @transform_1, window_bounds = array<i64: 1, 64>}, {pipeline_mode = #tpu.pipeline_mode<synchronous>, transform_indices = @transform_2, window_bounds = array<i64: 1, 64>}, {pipeline_mode = #tpu.pipeline_mode<synchronous>, transform_indices = @transform_3, window_bounds = array<i64: 64, 192>}, {pipeline_mode = #tpu.pipeline_mode<synchronous>, transform_indices = @transform_4, window_bounds = array<i64: 1, 192>}, {pipeline_mode = #tpu.pipeline_mode<synchronous>, transform_indices = @transform_5, window_bounds = array<i64: 64, 64>}, {pipeline_mode = #tpu.pipeline_mode<synchronous>, transform_indices = @transform_6, window_bounds = array<i64: 1, 64>}, {pipeline_mode = #tpu.pipeline_mode<synchronous>, transform_indices = @transform_7, window_bounds = array<i64: 1, 64>}, {pipeline_mode = #tpu.pipeline_mode<synchronous>, transform_indices = @transform_8, window_bounds = array<i64: 1, 64>}, {pipeline_mode = #tpu.pipeline_mode<synchronous>, transform_indices = @transform_9, window_bounds = array<i64: 64, 256>}, {pipeline_mode = #tpu.pipeline_mode<synchronous>, transform_indices = @transform_10, window_bounds = array<i64: 1, 256>}, {pipeline_mode = #tpu.pipeline_mode<synchronous>, transform_indices = @transform_11, window_bounds = array<i64: 256, 64>}, {pipeline_mode = #tpu.pipeline_mode<synchronous>, transform_indices = @transform_12, window_bounds = array<i64: 1, 64>}, {transform_indices = @transform_13, window_bounds = array<i64: 2, 8, 64>}]} {
    %c0 = arith.constant 0 : index
    %c0_0 = arith.constant 0 : index
    %0 = vector.load %arg2[%c0, %c0_0] : memref<1x64xf32, #tpu.memory_space<vmem>>, vector<1x64xf32>
    %1 = vector.shape_cast %0 : vector<1x64xf32> to vector<64xf32>
    %c0_1 = arith.constant 0 : index
    %c0_2 = arith.constant 0 : index
    %2 = vector.load %arg3[%c0_1, %c0_2] : memref<1x64xf32, #tpu.memory_space<vmem>>, vector<1x64xf32>
    %3 = vector.shape_cast %2 : vector<1x64xf32> to vector<64xf32>
    %c0_3 = arith.constant 0 : index
    %c0_4 = arith.constant 0 : index
    %4 = vector.load %arg4[%c0_3, %c0_4] : memref<64x192xbf16, #tpu.memory_space<vmem>>, vector<64x192xbf16>
    %c0_5 = arith.constant 0 : index
    %c0_6 = arith.constant 0 : index
    %5 = vector.load %arg5[%c0_5, %c0_6] : memref<1x192xf32, #tpu.memory_space<vmem>>, vector<1x192xf32>
    %6 = vector.shape_cast %5 : vector<1x192xf32> to vector<192xf32>
    %c0_7 = arith.constant 0 : index
    %c0_8 = arith.constant 0 : index
    %7 = vector.load %arg6[%c0_7, %c0_8] : memref<64x64xbf16, #tpu.memory_space<vmem>>, vector<64x64xbf16>
    %c0_9 = arith.constant 0 : index
    %c0_10 = arith.constant 0 : index
    %8 = vector.load %arg7[%c0_9, %c0_10] : memref<1x64xf32, #tpu.memory_space<vmem>>, vector<1x64xf32>
    %9 = vector.shape_cast %8 : vector<1x64xf32> to vector<64xf32>
    %c0_11 = arith.constant 0 : index
    %c0_12 = arith.constant 0 : index
    %10 = vector.load %arg8[%c0_11, %c0_12] : memref<1x64xf32, #tpu.memory_space<vmem>>, vector<1x64xf32>
    %11 = vector.shape_cast %10 : vector<1x64xf32> to vector<64xf32>
    %c0_13 = arith.constant 0 : index
    %c0_14 = arith.constant 0 : index
    %12 = vector.load %arg9[%c0_13, %c0_14] : memref<1x64xf32, #tpu.memory_space<vmem>>, vector<1x64xf32>
    %13 = vector.shape_cast %12 : vector<1x64xf32> to vector<64xf32>
    %c0_15 = arith.constant 0 : index
    %c0_16 = arith.constant 0 : index
    %14 = vector.load %arg13[%c0_15, %c0_16] : memref<1x64xf32, #tpu.memory_space<vmem>>, vector<1x64xf32>
    %15 = vector.shape_cast %14 : vector<1x64xf32> to vector<64xf32>
    %c0_17 = arith.constant 0 : index
    %c0_18 = arith.constant 0 : index
    %c0_19 = arith.constant 0 : index
    %16 = vector.load %arg1[%c0_17, %c0_18, %c0_19] : memref<2x8x64xf32, #tpu.memory_space<vmem>>, vector<2x8x64xf32>
    %17 = vector.shape_cast %16 : vector<2x8x64xf32> to vector<16x64xf32>
    %cst = arith.constant dense<0.000000e+00> : vector<16xf32>
    %18 = vector.multi_reduction <add>, %17, %cst [1] : vector<16x64xf32> to vector<16xf32>
    %19 = vector.shape_cast %18 : vector<16xf32> to vector<16x1xf32>
    %cst_20 = arith.constant 6.400000e+01 : f32
    %20 = vector.broadcast %cst_20 : f32 to vector<16x1xf32>
    %21 = arith.divf %19, %20 : vector<16x1xf32>
    %22 = vector.broadcast %21 : vector<16x1xf32> to vector<16x64xf32>
    %23 = arith.subf %17, %22 : vector<16x64xf32>
    %24 = vector.broadcast %21 : vector<16x1xf32> to vector<16x64xf32>
    %25 = arith.subf %17, %24 : vector<16x64xf32>
    %26 = arith.mulf %23, %25 : vector<16x64xf32>
    %cst_21 = arith.constant dense<0.000000e+00> : vector<16xf32>
    %27 = vector.multi_reduction <add>, %26, %cst_21 [1] : vector<16x64xf32> to vector<16xf32>
    %28 = vector.shape_cast %27 : vector<16xf32> to vector<16x1xf32>
    %cst_22 = arith.constant 6.400000e+01 : f32
    %29 = vector.broadcast %cst_22 : f32 to vector<16x1xf32>
    %30 = arith.divf %28, %29 : vector<16x1xf32>
    %31 = vector.broadcast %21 : vector<16x1xf32> to vector<16x64xf32>
    %32 = arith.subf %17, %31 : vector<16x64xf32>
    %cst_23 = arith.constant 9.99999997E-7 : f32
    %33 = vector.broadcast %cst_23 : f32 to vector<16x1xf32>
    %34 = arith.addf %30, %33 : vector<16x1xf32>
    %35 = math.rsqrt %34 : vector<16x1xf32>
    %36 = vector.broadcast %35 : vector<16x1xf32> to vector<16x64xf32>
    %37 = arith.mulf %32, %36 : vector<16x64xf32>
    %38 = vector.shape_cast %1 : vector<64xf32> to vector<1x64xf32>
    %39 = vector.broadcast %38 : vector<1x64xf32> to vector<16x64xf32>
    %40 = arith.mulf %37, %39 : vector<16x64xf32>
    %41 = vector.shape_cast %3 : vector<64xf32> to vector<1x64xf32>
    %42 = vector.broadcast %41 : vector<1x64xf32> to vector<16x64xf32>
    %43 = arith.addf %40, %42 : vector<16x64xf32>
    %44 = arith.truncf %43 : vector<16x64xf32> to vector<16x64xbf16>
    %cst_24 = arith.constant dense<0.000000e+00> : vector<16x192xf32>
    %45 = tpu.matmul %44, %4, %cst_24 {dimension_numbers = #tpu.dot_dimension_numbers<[1], [0], [0], [1], [0, 0, 1, 1], [], []>} : vector<16x64xbf16>, vector<64x192xbf16>, vector<16x192xf32> -> vector<16x192xf32>
    %46 = vector.shape_cast %6 : vector<192xf32> to vector<1x192xf32>
    %47 = vector.broadcast %46 : vector<1x192xf32> to vector<16x192xf32>
    %48 = arith.addf %45, %47 : vector<16x192xf32>
    %49 = vector.extract_strided_slice %48 {offsets = [0, 0], sizes = [16, 16], strides = [1, 1]} : vector<16x192xf32> to vector<16x16xf32>
    %50 = vector.shape_cast %49 : vector<16x16xf32> to vector<2x8x16xf32>
    %51 = arith.truncf %50 : vector<2x8x16xf32> to vector<2x8x16xbf16>
    %52 = vector.extract_strided_slice %48 {offsets = [0, 64], sizes = [16, 16], strides = [1, 1]} : vector<16x192xf32> to vector<16x16xf32>
    %53 = vector.shape_cast %52 : vector<16x16xf32> to vector<2x8x16xf32>
    %54 = arith.truncf %53 : vector<2x8x16xf32> to vector<2x8x16xbf16>
    %55 = vector.extract_strided_slice %48 {offsets = [0, 128], sizes = [16, 16], strides = [1, 1]} : vector<16x192xf32> to vector<16x16xf32>
    %56 = vector.shape_cast %55 : vector<16x16xf32> to vector<2x8x16xf32>
    %57 = arith.truncf %56 : vector<2x8x16xf32> to vector<2x8x16xbf16>
    "tpu.trace_start"() <{level = 10 : i32, message = "bqd,bkd->bqk"}> : () -> ()
    %cst_25 = arith.constant dense<0.000000e+00> : vector<2x8x8xf32>
    %58 = tpu.matmul %51, %54, %cst_25 {dimension_numbers = #tpu.dot_dimension_numbers<[2], [2], [1], [1], [0, 0, 0, 1, 1, 1], [0], [0]>} : vector<2x8x16xbf16>, vector<2x8x16xbf16>, vector<2x8x8xf32> -> vector<2x8x8xf32>
    "tpu.trace_stop"() : () -> ()
    %cst_26 = arith.constant dense<0xFF800000> : vector<2x8xf32>
    %59 = vector.multi_reduction <maximumf>, %58, %cst_26 [2] : vector<2x8x8xf32> to vector<2x8xf32>
    %60 = vector.shape_cast %59 : vector<2x8xf32> to vector<2x8x1xf32>
    %61 = vector.broadcast %60 : vector<2x8x1xf32> to vector<2x8x8xf32>
    %62 = arith.subf %58, %61 : vector<2x8x8xf32>
    %63 = math.exp %62 : vector<2x8x8xf32>
    %cst_27 = arith.constant dense<0.000000e+00> : vector<2x8xf32>
    %64 = vector.multi_reduction <add>, %63, %cst_27 [2] : vector<2x8x8xf32> to vector<2x8xf32>
    %65 = vector.shape_cast %64 : vector<2x8xf32> to vector<2x8x1xf32>
    %66 = tpu.reciprocal %65 {approx = true} : vector<2x8x1xf32> -> vector<2x8x1xf32>
    %67 = vector.broadcast %66 : vector<2x8x1xf32> to vector<2x8x8xf32>
    %68 = arith.mulf %63, %67 : vector<2x8x8xf32>
    %69 = arith.truncf %68 : vector<2x8x8xf32> to vector<2x8x8xbf16>
    "tpu.trace_start"() <{level = 10 : i32, message = "bqk,bkd->bqd"}> : () -> ()
    %cst_28 = arith.constant dense<0.000000e+00> : vector<2x8x16xf32>
    %70 = tpu.matmul %69, %57, %cst_28 {dimension_numbers = #tpu.dot_dimension_numbers<[2], [1], [1], [2], [0, 0, 0, 1, 1, 2], [0], [0]>} : vector<2x8x8xbf16>, vector<2x8x16xbf16>, vector<2x8x16xf32> -> vector<2x8x16xf32>
    "tpu.trace_stop"() : () -> ()
    %71 = vector.shape_cast %70 : vector<2x8x16xf32> to vector<16x16xf32>
    %72 = vector.extract_strided_slice %48 {offsets = [0, 16], sizes = [16, 16], strides = [1, 1]} : vector<16x192xf32> to vector<16x16xf32>
    %73 = vector.shape_cast %72 : vector<16x16xf32> to vector<2x8x16xf32>
    %74 = arith.truncf %73 : vector<2x8x16xf32> to vector<2x8x16xbf16>
    %75 = vector.extract_strided_slice %48 {offsets = [0, 80], sizes = [16, 16], strides = [1, 1]} : vector<16x192xf32> to vector<16x16xf32>
    %76 = vector.shape_cast %75 : vector<16x16xf32> to vector<2x8x16xf32>
    %77 = arith.truncf %76 : vector<2x8x16xf32> to vector<2x8x16xbf16>
    %78 = vector.extract_strided_slice %48 {offsets = [0, 144], sizes = [16, 16], strides = [1, 1]} : vector<16x192xf32> to vector<16x16xf32>
    %79 = vector.shape_cast %78 : vector<16x16xf32> to vector<2x8x16xf32>
    %80 = arith.truncf %79 : vector<2x8x16xf32> to vector<2x8x16xbf16>
    "tpu.trace_start"() <{level = 10 : i32, message = "bqd,bkd->bqk"}> : () -> ()
    %cst_29 = arith.constant dense<0.000000e+00> : vector<2x8x8xf32>
    %81 = tpu.matmul %74, %77, %cst_29 {dimension_numbers = #tpu.dot_dimension_numbers<[2], [2], [1], [1], [0, 0, 0, 1, 1, 1], [0], [0]>} : vector<2x8x16xbf16>, vector<2x8x16xbf16>, vector<2x8x8xf32> -> vector<2x8x8xf32>
    "tpu.trace_stop"() : () -> ()
    %cst_30 = arith.constant dense<0xFF800000> : vector<2x8xf32>
    %82 = vector.multi_reduction <maximumf>, %81, %cst_30 [2] : vector<2x8x8xf32> to vector<2x8xf32>
    %83 = vector.shape_cast %82 : vector<2x8xf32> to vector<2x8x1xf32>
    %84 = vector.broadcast %83 : vector<2x8x1xf32> to vector<2x8x8xf32>
    %85 = arith.subf %81, %84 : vector<2x8x8xf32>
    %86 = math.exp %85 : vector<2x8x8xf32>
    %cst_31 = arith.constant dense<0.000000e+00> : vector<2x8xf32>
    %87 = vector.multi_reduction <add>, %86, %cst_31 [2] : vector<2x8x8xf32> to vector<2x8xf32>
    %88 = vector.shape_cast %87 : vector<2x8xf32> to vector<2x8x1xf32>
    %89 = tpu.reciprocal %88 {approx = true} : vector<2x8x1xf32> -> vector<2x8x1xf32>
    %90 = vector.broadcast %89 : vector<2x8x1xf32> to vector<2x8x8xf32>
    %91 = arith.mulf %86, %90 : vector<2x8x8xf32>
    %92 = arith.truncf %91 : vector<2x8x8xf32> to vector<2x8x8xbf16>
    "tpu.trace_start"() <{level = 10 : i32, message = "bqk,bkd->bqd"}> : () -> ()
    %cst_32 = arith.constant dense<0.000000e+00> : vector<2x8x16xf32>
    %93 = tpu.matmul %92, %80, %cst_32 {dimension_numbers = #tpu.dot_dimension_numbers<[2], [1], [1], [2], [0, 0, 0, 1, 1, 2], [0], [0]>} : vector<2x8x8xbf16>, vector<2x8x16xbf16>, vector<2x8x16xf32> -> vector<2x8x16xf32>
    "tpu.trace_stop"() : () -> ()
    %94 = vector.shape_cast %93 : vector<2x8x16xf32> to vector<16x16xf32>
    %95 = vector.extract_strided_slice %48 {offsets = [0, 32], sizes = [16, 16], strides = [1, 1]} : vector<16x192xf32> to vector<16x16xf32>
    %96 = vector.shape_cast %95 : vector<16x16xf32> to vector<2x8x16xf32>
    %97 = arith.truncf %96 : vector<2x8x16xf32> to vector<2x8x16xbf16>
    %98 = vector.extract_strided_slice %48 {offsets = [0, 96], sizes = [16, 16], strides = [1, 1]} : vector<16x192xf32> to vector<16x16xf32>
    %99 = vector.shape_cast %98 : vector<16x16xf32> to vector<2x8x16xf32>
    %100 = arith.truncf %99 : vector<2x8x16xf32> to vector<2x8x16xbf16>
    %101 = vector.extract_strided_slice %48 {offsets = [0, 160], sizes = [16, 16], strides = [1, 1]} : vector<16x192xf32> to vector<16x16xf32>
    %102 = vector.shape_cast %101 : vector<16x16xf32> to vector<2x8x16xf32>
    %103 = arith.truncf %102 : vector<2x8x16xf32> to vector<2x8x16xbf16>
    "tpu.trace_start"() <{level = 10 : i32, message = "bqd,bkd->bqk"}> : () -> ()
    %cst_33 = arith.constant dense<0.000000e+00> : vector<2x8x8xf32>
    %104 = tpu.matmul %97, %100, %cst_33 {dimension_numbers = #tpu.dot_dimension_numbers<[2], [2], [1], [1], [0, 0, 0, 1, 1, 1], [0], [0]>} : vector<2x8x16xbf16>, vector<2x8x16xbf16>, vector<2x8x8xf32> -> vector<2x8x8xf32>
    "tpu.trace_stop"() : () -> ()
    %cst_34 = arith.constant dense<0xFF800000> : vector<2x8xf32>
    %105 = vector.multi_reduction <maximumf>, %104, %cst_34 [2] : vector<2x8x8xf32> to vector<2x8xf32>
    %106 = vector.shape_cast %105 : vector<2x8xf32> to vector<2x8x1xf32>
    %107 = vector.broadcast %106 : vector<2x8x1xf32> to vector<2x8x8xf32>
    %108 = arith.subf %104, %107 : vector<2x8x8xf32>
    %109 = math.exp %108 : vector<2x8x8xf32>
    %cst_35 = arith.constant dense<0.000000e+00> : vector<2x8xf32>
    %110 = vector.multi_reduction <add>, %109, %cst_35 [2] : vector<2x8x8xf32> to vector<2x8xf32>
    %111 = vector.shape_cast %110 : vector<2x8xf32> to vector<2x8x1xf32>
    %112 = tpu.reciprocal %111 {approx = true} : vector<2x8x1xf32> -> vector<2x8x1xf32>
    %113 = vector.broadcast %112 : vector<2x8x1xf32> to vector<2x8x8xf32>
    %114 = arith.mulf %109, %113 : vector<2x8x8xf32>
    %115 = arith.truncf %114 : vector<2x8x8xf32> to vector<2x8x8xbf16>
    "tpu.trace_start"() <{level = 10 : i32, message = "bqk,bkd->bqd"}> : () -> ()
    %cst_36 = arith.constant dense<0.000000e+00> : vector<2x8x16xf32>
    %116 = tpu.matmul %115, %103, %cst_36 {dimension_numbers = #tpu.dot_dimension_numbers<[2], [1], [1], [2], [0, 0, 0, 1, 1, 2], [0], [0]>} : vector<2x8x8xbf16>, vector<2x8x16xbf16>, vector<2x8x16xf32> -> vector<2x8x16xf32>
    "tpu.trace_stop"() : () -> ()
    %117 = vector.shape_cast %116 : vector<2x8x16xf32> to vector<16x16xf32>
    %118 = vector.extract_strided_slice %48 {offsets = [0, 48], sizes = [16, 16], strides = [1, 1]} : vector<16x192xf32> to vector<16x16xf32>
    %119 = vector.shape_cast %118 : vector<16x16xf32> to vector<2x8x16xf32>
    %120 = arith.truncf %119 : vector<2x8x16xf32> to vector<2x8x16xbf16>
    %121 = vector.extract_strided_slice %48 {offsets = [0, 112], sizes = [16, 16], strides = [1, 1]} : vector<16x192xf32> to vector<16x16xf32>
    %122 = vector.shape_cast %121 : vector<16x16xf32> to vector<2x8x16xf32>
    %123 = arith.truncf %122 : vector<2x8x16xf32> to vector<2x8x16xbf16>
    %124 = vector.extract_strided_slice %48 {offsets = [0, 176], sizes = [16, 16], strides = [1, 1]} : vector<16x192xf32> to vector<16x16xf32>
    %125 = vector.shape_cast %124 : vector<16x16xf32> to vector<2x8x16xf32>
    %126 = arith.truncf %125 : vector<2x8x16xf32> to vector<2x8x16xbf16>
    "tpu.trace_start"() <{level = 10 : i32, message = "bqd,bkd->bqk"}> : () -> ()
    %cst_37 = arith.constant dense<0.000000e+00> : vector<2x8x8xf32>
    %127 = tpu.matmul %120, %123, %cst_37 {dimension_numbers = #tpu.dot_dimension_numbers<[2], [2], [1], [1], [0, 0, 0, 1, 1, 1], [0], [0]>} : vector<2x8x16xbf16>, vector<2x8x16xbf16>, vector<2x8x8xf32> -> vector<2x8x8xf32>
    "tpu.trace_stop"() : () -> ()
    %cst_38 = arith.constant dense<0xFF800000> : vector<2x8xf32>
    %128 = vector.multi_reduction <maximumf>, %127, %cst_38 [2] : vector<2x8x8xf32> to vector<2x8xf32>
    %129 = vector.shape_cast %128 : vector<2x8xf32> to vector<2x8x1xf32>
    %130 = vector.broadcast %129 : vector<2x8x1xf32> to vector<2x8x8xf32>
    %131 = arith.subf %127, %130 : vector<2x8x8xf32>
    %132 = math.exp %131 : vector<2x8x8xf32>
    %cst_39 = arith.constant dense<0.000000e+00> : vector<2x8xf32>
    %133 = vector.multi_reduction <add>, %132, %cst_39 [2] : vector<2x8x8xf32> to vector<2x8xf32>
    %134 = vector.shape_cast %133 : vector<2x8xf32> to vector<2x8x1xf32>
    %135 = tpu.reciprocal %134 {approx = true} : vector<2x8x1xf32> -> vector<2x8x1xf32>
    %136 = vector.broadcast %135 : vector<2x8x1xf32> to vector<2x8x8xf32>
    %137 = arith.mulf %132, %136 : vector<2x8x8xf32>
    %138 = arith.truncf %137 : vector<2x8x8xf32> to vector<2x8x8xbf16>
    "tpu.trace_start"() <{level = 10 : i32, message = "bqk,bkd->bqd"}> : () -> ()
    %cst_40 = arith.constant dense<0.000000e+00> : vector<2x8x16xf32>
    %139 = tpu.matmul %138, %126, %cst_40 {dimension_numbers = #tpu.dot_dimension_numbers<[2], [1], [1], [2], [0, 0, 0, 1, 1, 2], [0], [0]>} : vector<2x8x8xbf16>, vector<2x8x16xbf16>, vector<2x8x16xf32> -> vector<2x8x16xf32>
    "tpu.trace_stop"() : () -> ()
    %140 = vector.shape_cast %139 : vector<2x8x16xf32> to vector<16x16xf32>
    %141 = tpu.concatenate %71, %94, %117, %140 in 1 : vector<16x16xf32>, vector<16x16xf32>, vector<16x16xf32>, vector<16x16xf32> -> vector<16x64xf32>
    %142 = arith.truncf %141 : vector<16x64xf32> to vector<16x64xbf16>
    %cst_41 = arith.constant dense<0.000000e+00> : vector<16x64xf32>
    %143 = tpu.matmul %142, %7, %cst_41 {dimension_numbers = #tpu.dot_dimension_numbers<[1], [0], [0], [1], [0, 0, 1, 1], [], []>} : vector<16x64xbf16>, vector<64x64xbf16>, vector<16x64xf32> -> vector<16x64xf32>
    %144 = vector.shape_cast %9 : vector<64xf32> to vector<1x64xf32>
    %145 = vector.broadcast %144 : vector<1x64xf32> to vector<16x64xf32>
    %146 = arith.addf %143, %145 : vector<16x64xf32>
    %147 = arith.addf %17, %146 : vector<16x64xf32>
    %cst_42 = arith.constant dense<0.000000e+00> : vector<16xf32>
    %148 = vector.multi_reduction <add>, %147, %cst_42 [1] : vector<16x64xf32> to vector<16xf32>
    %149 = vector.shape_cast %148 : vector<16xf32> to vector<16x1xf32>
    %cst_43 = arith.constant 6.400000e+01 : f32
    %150 = vector.broadcast %cst_43 : f32 to vector<16x1xf32>
    %151 = arith.divf %149, %150 : vector<16x1xf32>
    %152 = vector.broadcast %151 : vector<16x1xf32> to vector<16x64xf32>
    %153 = arith.subf %147, %152 : vector<16x64xf32>
    %154 = vector.broadcast %151 : vector<16x1xf32> to vector<16x64xf32>
    %155 = arith.subf %147, %154 : vector<16x64xf32>
    %156 = arith.mulf %153, %155 : vector<16x64xf32>
    %cst_44 = arith.constant dense<0.000000e+00> : vector<16xf32>
    %157 = vector.multi_reduction <add>, %156, %cst_44 [1] : vector<16x64xf32> to vector<16xf32>
    %158 = vector.shape_cast %157 : vector<16xf32> to vector<16x1xf32>
    %cst_45 = arith.constant 6.400000e+01 : f32
    %159 = vector.broadcast %cst_45 : f32 to vector<16x1xf32>
    %160 = arith.divf %158, %159 : vector<16x1xf32>
    %161 = vector.broadcast %151 : vector<16x1xf32> to vector<16x64xf32>
    %162 = arith.subf %147, %161 : vector<16x64xf32>
    %cst_46 = arith.constant 9.99999997E-7 : f32
    %163 = vector.broadcast %cst_46 : f32 to vector<16x1xf32>
    %164 = arith.addf %160, %163 : vector<16x1xf32>
    %165 = math.rsqrt %164 : vector<16x1xf32>
    %166 = vector.broadcast %165 : vector<16x1xf32> to vector<16x64xf32>
    %167 = arith.mulf %162, %166 : vector<16x64xf32>
    %168 = vector.shape_cast %11 : vector<64xf32> to vector<1x64xf32>
    %169 = vector.broadcast %168 : vector<1x64xf32> to vector<16x64xf32>
    %170 = arith.mulf %167, %169 : vector<16x64xf32>
    %171 = vector.shape_cast %13 : vector<64xf32> to vector<1x64xf32>
    %172 = vector.broadcast %171 : vector<1x64xf32> to vector<16x64xf32>
    %173 = arith.addf %170, %172 : vector<16x64xf32>
    %174 = arith.truncf %173 : vector<16x64xf32> to vector<16x64xbf16>
    %c0_47 = arith.constant 0 : index
    %c0_48 = arith.constant 0 : index
    %175 = vector.load %arg10[%c0_47, %c0_48] : memref<64x256xbf16, #tpu.memory_space<vmem>>, vector<64x256xbf16>
    %cst_49 = arith.constant dense<0.000000e+00> : vector<16x256xf32>
    %176 = tpu.matmul %174, %175, %cst_49 {dimension_numbers = #tpu.dot_dimension_numbers<[1], [0], [0], [1], [0, 0, 1, 1], [], []>} : vector<16x64xbf16>, vector<64x256xbf16>, vector<16x256xf32> -> vector<16x256xf32>
    %c0_50 = arith.constant 0 : index
    %c0_51 = arith.constant 0 : index
    %177 = vector.load %arg11[%c0_50, %c0_51] : memref<1x256xf32, #tpu.memory_space<vmem>>, vector<1x256xf32>
    %178 = vector.shape_cast %177 : vector<1x256xf32> to vector<256xf32>
    %179 = vector.shape_cast %178 : vector<256xf32> to vector<1x256xf32>
    %180 = vector.broadcast %179 : vector<1x256xf32> to vector<16x256xf32>
    %181 = arith.addf %176, %180 : vector<16x256xf32>
    %cst_52 = arith.constant 0.707106769 : f32
    %182 = vector.broadcast %cst_52 : f32 to vector<16x256xf32>
    %183 = arith.mulf %181, %182 : vector<16x256xf32>
    %184 = math.absf %183 : vector<16x256xf32>
    %cst_53 = arith.constant 0.327591091 : f32
    %185 = vector.broadcast %cst_53 : f32 to vector<16x256xf32>
    %186 = arith.mulf %185, %184 : vector<16x256xf32>
    %cst_54 = arith.constant 1.000000e+00 : f32
    %187 = vector.broadcast %cst_54 : f32 to vector<16x256xf32>
    %188 = arith.addf %187, %186 : vector<16x256xf32>
    %cst_55 = arith.constant 1.000000e+00 : f32
    %189 = vector.broadcast %cst_55 : f32 to vector<16x256xf32>
    %190 = arith.divf %189, %188 : vector<16x256xf32>
    %cst_56 = arith.constant 1.06140542 : f32
    %191 = vector.broadcast %cst_56 : f32 to vector<16x256xf32>
    %192 = arith.mulf %190, %191 : vector<16x256xf32>
    %cst_57 = arith.constant -1.45315206 : f32
    %193 = vector.broadcast %cst_57 : f32 to vector<16x256xf32>
    %194 = arith.addf %193, %192 : vector<16x256xf32>
    %195 = arith.mulf %190, %194 : vector<16x256xf32>
    %cst_58 = arith.constant 1.42141378 : f32
    %196 = vector.broadcast %cst_58 : f32 to vector<16x256xf32>
    %197 = arith.addf %196, %195 : vector<16x256xf32>
    %198 = arith.mulf %190, %197 : vector<16x256xf32>
    %cst_59 = arith.constant -0.284496725 : f32
    %199 = vector.broadcast %cst_59 : f32 to vector<16x256xf32>
    %200 = arith.addf %199, %198 : vector<16x256xf32>
    %201 = arith.mulf %190, %200 : vector<16x256xf32>
    %cst_60 = arith.constant 0.254829586 : f32
    %202 = vector.broadcast %cst_60 : f32 to vector<16x256xf32>
    %203 = arith.addf %202, %201 : vector<16x256xf32>
    %204 = arith.mulf %190, %203 : vector<16x256xf32>
    %cst_61 = arith.constant 0.000000e+00 : f32
    %205 = vector.broadcast %cst_61 : f32 to vector<16x256xf32>
    %206 = arith.subf %205, %184 : vector<16x256xf32>
    %207 = arith.mulf %206, %184 : vector<16x256xf32>
    %208 = math.exp %207 : vector<16x256xf32>
    %209 = arith.mulf %204, %208 : vector<16x256xf32>
    %cst_62 = arith.constant 1.000000e+00 : f32
    %210 = vector.broadcast %cst_62 : f32 to vector<16x256xf32>
    %211 = arith.subf %210, %209 : vector<16x256xf32>
    %cst_63 = arith.constant 0.000000e+00 : f32
    %212 = vector.broadcast %cst_63 : f32 to vector<16x256xf32>
    %213 = arith.cmpf oge, %183, %212 : vector<16x256xf32>
    %cst_64 = arith.constant 0.000000e+00 : f32
    %214 = vector.broadcast %cst_64 : f32 to vector<16x256xf32>
    %215 = arith.subf %214, %211 : vector<16x256xf32>
    %216 = arith.select %213, %211, %215 : vector<16x256xi1>, vector<16x256xf32>
    %cst_65 = arith.constant 5.000000e-01 : f32
    %217 = vector.broadcast %cst_65 : f32 to vector<16x256xf32>
    %218 = arith.mulf %217, %181 : vector<16x256xf32>
    %cst_66 = arith.constant 1.000000e+00 : f32
    %219 = vector.broadcast %cst_66 : f32 to vector<16x256xf32>
    %220 = arith.addf %219, %216 : vector<16x256xf32>
    %221 = arith.mulf %218, %220 : vector<16x256xf32>
    %222 = arith.truncf %221 : vector<16x256xf32> to vector<16x256xbf16>
    %c0_67 = arith.constant 0 : index
    %c0_68 = arith.constant 0 : index
    %223 = vector.load %arg12[%c0_67, %c0_68] : memref<256x64xbf16, #tpu.memory_space<vmem>>, vector<256x64xbf16>
    %cst_69 = arith.constant dense<0.000000e+00> : vector<16x64xf32>
    %224 = tpu.matmul %222, %223, %cst_69 {dimension_numbers = #tpu.dot_dimension_numbers<[1], [0], [0], [1], [0, 0, 1, 1], [], []>} : vector<16x256xbf16>, vector<256x64xbf16>, vector<16x64xf32> -> vector<16x64xf32>
    %225 = vector.shape_cast %15 : vector<64xf32> to vector<1x64xf32>
    %226 = vector.broadcast %225 : vector<1x64xf32> to vector<16x64xf32>
    %227 = arith.addf %224, %226 : vector<16x64xf32>
    %228 = arith.addf %147, %227 : vector<16x64xf32>
    %229 = vector.shape_cast %228 : vector<16x64xf32> to vector<2x8x64xf32>
    %c0_70 = arith.constant 0 : index
    %c0_71 = arith.constant 0 : index
    %c0_72 = arith.constant 0 : index
    %230 = vector.load %arg14[%c0_70, %c0_71, %c0_72] : memref<2x8x64xf32, #tpu.memory_space<vmem>>, vector<2x8x64xf32>
    tpu.vector_store %arg14[%c0_70, %c0_71, %c0_72], %229 {strides = array<i32>} : memref<2x8x64xf32, #tpu.memory_space<vmem>>, vector<2x8x64xf32>,
    return
  }
  func.func @transform_0(%arg0: i32) -> (i32, i32, i32) {
    %c0_i32 = arith.constant 0 : i32
    %c0_i32_0 = arith.constant 0 : i32
    %c0_i32_1 = arith.constant 0 : i32
    return %arg0, %c0_i32, %c0_i32_0 : i32, i32, i32
  }
  func.func @transform_1(%arg0: i32) -> (i32, i32) {
    %c0_i32 = arith.constant 0 : i32
    %c0_i32_0 = arith.constant 0 : i32
    %c0_i32_1 = arith.constant 0 : i32
    return %c0_i32, %c0_i32_0 : i32, i32
  }
  func.func @transform_2(%arg0: i32) -> (i32, i32) {
    %c0_i32 = arith.constant 0 : i32
    %c0_i32_0 = arith.constant 0 : i32
    %c0_i32_1 = arith.constant 0 : i32
    return %c0_i32, %c0_i32_0 : i32, i32
  }
  func.func @transform_3(%arg0: i32) -> (i32, i32) {
    %c0_i32 = arith.constant 0 : i32
    %c0_i32_0 = arith.constant 0 : i32
    %c0_i32_1 = arith.constant 0 : i32
    return %c0_i32, %c0_i32_0 : i32, i32
  }
  func.func @transform_4(%arg0: i32) -> (i32, i32) {
    %c0_i32 = arith.constant 0 : i32
    %c0_i32_0 = arith.constant 0 : i32
    %c0_i32_1 = arith.constant 0 : i32
    return %c0_i32, %c0_i32_0 : i32, i32
  }
  func.func @transform_5(%arg0: i32) -> (i32, i32) {
    %c0_i32 = arith.constant 0 : i32
    %c0_i32_0 = arith.constant 0 : i32
    %c0_i32_1 = arith.constant 0 : i32
    return %c0_i32, %c0_i32_0 : i32, i32
  }
  func.func @transform_6(%arg0: i32) -> (i32, i32) {
    %c0_i32 = arith.constant 0 : i32
    %c0_i32_0 = arith.constant 0 : i32
    %c0_i32_1 = arith.constant 0 : i32
    return %c0_i32, %c0_i32_0 : i32, i32
  }
  func.func @transform_7(%arg0: i32) -> (i32, i32) {
    %c0_i32 = arith.constant 0 : i32
    %c0_i32_0 = arith.constant 0 : i32
    %c0_i32_1 = arith.constant 0 : i32
    return %c0_i32, %c0_i32_0 : i32, i32
  }
  func.func @transform_8(%arg0: i32) -> (i32, i32) {
    %c0_i32 = arith.constant 0 : i32
    %c0_i32_0 = arith.constant 0 : i32
    %c0_i32_1 = arith.constant 0 : i32
    return %c0_i32, %c0_i32_0 : i32, i32
  }
  func.func @transform_9(%arg0: i32) -> (i32, i32) {
    %c0_i32 = arith.constant 0 : i32
    %c0_i32_0 = arith.constant 0 : i32
    %c0_i32_1 = arith.constant 0 : i32
    return %c0_i32, %c0_i32_0 : i32, i32
  }
  func.func @transform_10(%arg0: i32) -> (i32, i32) {
    %c0_i32 = arith.constant 0 : i32
    %c0_i32_0 = arith.constant 0 : i32
    %c0_i32_1 = arith.constant 0 : i32
    return %c0_i32, %c0_i32_0 : i32, i32
  }
  func.func @transform_11(%arg0: i32) -> (i32, i32) {
    %c0_i32 = arith.constant 0 : i32
    %c0_i32_0 = arith.constant 0 : i32
    %c0_i32_1 = arith.constant 0 : i32
    return %c0_i32, %c0_i32_0 : i32, i32
  }
  func.func @transform_12(%arg0: i32) -> (i32, i32) {
    %c0_i32 = arith.constant 0 : i32
    %c0_i32_0 = arith.constant 0 : i32
    %c0_i32_1 = arith.constant 0 : i32
    return %c0_i32, %c0_i32_0 : i32, i32
  }
  func.func @transform_13(%arg0: i32) -> (i32, i32, i32) {
    %c0_i32 = arith.constant 0 : i32
    %c0_i32_0 = arith.constant 0 : i32
    %c0_i32_1 = arith.constant 0 : i32
    return %arg0, %c0_i32, %c0_i32_0 : i32, i32, i32
  }
}

</mosaic_0001>

<bundles_post_ra>
// kernel: tpu_custom_call.1
= control target key start
LH: loop header
LB: loop body
LE: loop exit
PB: predicated region body
PF: predicated region fallthrough
CT: control target
= control target key end

     0   :  { %vm71_vm0 = vcmask 523264   ;;  %s2523_s0 = inlined_call_operand.vmem [shape: f32[2,8,64], index: 0, kind: input, shape index: {}]   ;;  %s2524_s1 = inlined_call_operand.vmem [shape: f32[1,64], index: 1, kind: input, shape index: {}]   ;;  %s2525_s2 = inlined_call_operand.vmem [shape: f32[1,64], index: 2, kind: input, shape index: {}]   ;;  %s2526_s3 = inlined_call_operand.vmem [shape: bf16[64,192], index: 3, kind: input, shape index: {}]   ;;  %s2527_s4 = inlined_call_operand.vmem [shape: f32[1,192], index: 4, kind: input, shape index: {}]   ;;  %s2528_s5 = inlined_call_operand.vmem [shape: bf16[64,64], index: 5, kind: input, shape index: {}]   ;;  %s2529_s6 = inlined_call_operand.vmem [shape: f32[1,64], index: 6, kind: input, shape index: {}]   ;;  %s2530_s7 = inlined_call_operand.vmem [shape: f32[1,64], index: 7, kind: input, shape index: {}]   ;;  %s2531_s8 = inlined_call_operand.vmem [shape: f32[1,64], index: 8, kind: input, shape index: {}]   ;;  %s2532_s9 = inlined_call_operand.vmem [shape: bf16[64,256], index: 9, kind: input, shape index: {}]   ;;  %s2533_s10 = inlined_call_operand.vmem [shape: f32[1,256], index: 10, kind: input, shape index: {}]   ;;  %s2534_s11 = inlined_call_operand.vmem [shape: bf16[256,64], index: 11, kind: input, shape index: {}]   ;;  %s2535_s12 = inlined_call_operand.vmem [shape: f32[1,64], index: 12, kind: input, shape index: {}]   ;;  %s2536_s13 = inlined_call_operand.hbm [shape: f32[2,8,64], index: 13, kind: output, shape index: {}]  }
   0x1   :  { %v2125_v0 = vld [vmem:[%s2523_s0] sm:$0xff]  ;;  %v2130_v1 = vld [vmem:[%s2523_s0 + $0x8] sm:$0xff] }
   0x2   :  { %v72_v2 = vsel %vm71_vm0, %v2125_v0, 0.0  ;;  %v75_v3 = vsel %vm71_vm0, %v2130_v1, 0.0 }
   0x3   :  { %73 = vadd.xlane.f32.xlu0 %v72_v2 }
   0x7   :  { %76 = vadd.xlane.f32.xlu0 %v75_v3 }
   0x8   :  { %18 = vsyncpa [#allocation3], 0  ;;  %v1915_v14 = vld [vmem:[%s2526_s3 + $0x4] ss:$8 sps:$4 sm:$0xff]   ;;  %v1917_v15 = vld [vmem:[%s2526_s3] ss:$8 sps:$4 sm:$0xff]   ;;  %v117_v41 = vlaneseq }
   0x9   :  { %170 = vmatprep.subr.bf16.mxu1 %v1915_v14  ;;  %v1918_v16 = vld [vmem:[%s2526_s3 + $0x14] ss:$8 sps:$4 sm:$0xff]   ;;  %v1920_v17 = vld [vmem:[%s2526_s3 + $0x10] ss:$8 sps:$4 sm:$0xff]   ;;  %v1921_v18 = vld [vmem:[%s2526_s3 + $0x24] ss:$8 sps:$4 sm:$0xff]  }
   0xa   :  { %171 = vmatpush1.bf16.msra.mxu1 %v1917_v15  ;;  %v1923_v19 = vld [vmem:[%s2526_s3 + $0x20] ss:$8 sps:$4 sm:$0xff]   ;;  %v1924_v20 = vld [vmem:[%s2526_s3 + $0x34] ss:$8 sps:$4 sm:$0xff]   ;;  %v1926_v21 = vld [vmem:[%s2526_s3 + $0x30] ss:$8 sps:$4 sm:$0xff]  }
   0xb   :  { %172 = vmatprep.subr.bf16.mxu1 %v1918_v16  ;;  %v2039_v22 = vmov 0   ;;  %v1659_v31 = vld [vmem:[%s2524_s1] ss:$0 sm:$0xff]  ;;  %v2040_v40 = vmov 0.0   ;;  %v2174_v42 = vshrl.u32 %v117_v41, 7  ;;  %vm2041_vm1 = vmmov 0  }
   0xc   :  { %202 = vmatprep.mubr.bf16.mxu1 %v2039_v22  ;;  %v1660_v35 = vld [vmem:[%s2525_s2] ss:$0 sm:$0xff]  ;;  %1791 = vmatprep.subr.bf16.mxu0 %v2040_v40  ;;  %vm344_vm2 = vcmask 1043456   ;;  %s2042_s2 = smov 64   ;;  %vm220_vm3 = vcmask 130048   ;;  %vm316_vm4 = vcmask 64512  }
   0xd   :  { %v119_v43 = vsub.s32 0, %v2174_v42  ;;  %v56_v44 = vld [vmem:[%s2527_s4] sm:$0x3]  ;;  %v123_v45 = vsub.s32 1, %v2174_v42  ;;  %1793 = vmatprep.mubr.msk.bf16.mxu0 %vm2041_vm1, %v2040_v40  ;;  %s2043_s4 = smov 48   ;;  %s2044_s30 = smov 112  }
   0xe   :  { %173 = vmatpush1.bf16.msra.mxu1 %v1920_v17  ;;  %s2045_s14 = smov 32   ;;  %s2046_s15 = smov 96   ;;  %vm1122_vm5 = vcmask 261120   ;;  %vm1125_vm6 = vcmask 392192  }
   0xf   :  { %174 = vmatprep.subr.bf16.mxu1 %v1921_v18  ;;  %v120_v46 = vrot.slane %v56_v44, %v119_v43  ;;  %v124_v47 = vrot.slane %v56_v44, %v123_v45  ;;  %s2047_s16 = smov 16   ;;  %s2048_s17 = smov 80  }
  0x12   :  { %175 = vmatpush1.bf16.msra.mxu1 %v1923_v19 }
  0x13   :  { %176 = vmatprep.subr.bf16.mxu1 %v1924_v20 }
  0x16   :  { %177 = vmatpush1.bf16.msra.mxu1 %v1926_v21 }
  0x17   :  { %1779 = vmatprep.subr.bf16.mxu1 %v2040_v40 }
  0x90   :  { %v74_v4 = vpop.xlane.xlu0 %73 }
  0x91   :  { %v79_v5 = vmul.f32 0.015625, %v74_v4 }
  0x93   :  { %v81_v6 = vsub.f32 %v2125_v0, %v79_v5 }
  0x94   :  { %v77_v7 = vpop.xlane.xlu0 %76 }
  0x95   :  { %v80_v8 = vmul.f32 0.015625, %v77_v7  ;;  %v83_v9 = vmul.f32 %v81_v6, %v81_v6 }
  0x97   :  { %v82_v10 = vsub.f32 %v2130_v1, %v80_v8  ;;  %v85_v11 = vsel %vm71_vm0, %v83_v9, 0.0 }
  0x98   :  { %86 = vadd.xlane.f32.xlu1 %v85_v11 }
  0x99   :  { %v84_v12 = vmul.f32 %v82_v10, %v82_v10 }
  0x9b   :  { %v88_v13 = vsel %vm71_vm0, %v84_v12, 0.0 }
  0x9c   :  { %89 = vadd.xlane.f32.xlu1 %v88_v13 }
 0x125   :  { %v87_v23 = vpop.xlane.xlu1 %86 }
 0x126   :  { %v91_v24 = vmul.f32 0.015625, %v87_v23 }
 0x128   :  { %v93_v25 = vadd.f32 1e-06, %v91_v24 }
 0x129   :  { %v90_v26 = vpop.xlane.xlu1 %89 }
 0x12a   :  { %1959 = vrsqrt.f32 %v93_v25  ;;  %v92_v27 = vmul.f32 0.015625, %v90_v26 }
 0x12c   :  { %v94_v28 = vadd.f32 1e-06, %v92_v27 }
 0x12e   :  { %1961 = vrsqrt.f32 %v94_v28 }
 0x134   :  { %v1960_v29 = vpop.eup %1959 }
 0x135   :  { %v97_v30 = vmul.f32 %v1960_v29, %v81_v6 }
 0x137   :  { %v105_v34 = vmul.f32 %v1659_v31, %v97_v30 }
 0x138   :  { %v1962_v32 = vpop.eup %1961 }
 0x139   :  { %v98_v33 = vmul.f32 %v1962_v32, %v82_v10  ;;  %v113_v37 = vadd.f32 %v1660_v35, %v105_v34 }
 0x13b   :  { %v106_v36 = vmul.f32 %v1659_v31, %v98_v33 }
 0x13d   :  { %v114_v38 = vadd.f32 %v1660_v35, %v106_v36 }
 0x13f   :  { %v115_v39 = vpack.c.bf16 %v114_v38, %v113_v37 }
 0x141   :  { %1669 = vmatmul.mubr.msk.bf16.vlgmr.msra.gmra.mrb[0].mxu1 %vm71_vm0, %v115_v39 }
 0x142   :  { %1781 = vmatprep.mubr.msk.bf16.mxu1 %vm2041_vm1, %v2040_v40 }
 0x214   :  { %v204_v48 = vpop.f32.mrb[0].mxu1 }
 0x215   :  { %v205_v49 = vadd.f32 %v204_v48, %v120_v46  ;;  %v206_v50 = vpop.f32.mrb[1].mxu1 }
 0x216   :  { %v207_v51 = vadd.f32 %v206_v50, %v124_v47  ;;  %v208_v52 = vpop.f32.mrb[2].mxu1 }
 0x217   :  { %v2189_v53 = vpack.c.bf16 %v205_v49, %v205_v49  ;;  %v209_v54 = vadd.f32 %v208_v52, %v120_v46  ;;  %v210_v55 = vpop.f32.mrb[3].mxu1 }
 0x218   :  { %v2191_v56 = vpack.c.bf16 %v207_v51, %v207_v51  ;;  %v211_v57 = vadd.f32 %v210_v55, %v124_v47 }
 0x219   :  { %v2193_v58 = vpack.c.bf16 %v209_v54, %v209_v54  ;;  %218 = vrot.lane.b32.xlu0 %v2189_v53, %s2042_s2 }
 0x21a   :  { %v346_v59 = vsel %vm344_vm2, %v2191_v56, 0  ;;  %v2208_v2 = vpack.c.bf16 %v211_v57, %v211_v57 }
 0x21b   :  { %268 = vrot.lane.b32.xlu1 %v2193_v58, %s2042_s2  ;;  %1792 = vmatpush3.bf16.msra.mxu0 %v346_v59 }
 0x21c   :  { %1803 = vmatprep.subr.bf16.mxu0 %v2040_v40  ;;  %v392_v3 = vsel %vm344_vm2, %v2208_v2, 0 }
 0x28b   :  { %v219_v60 = vpop.permute.xlu0 %218 }
 0x28c   :  { %v225_v61 = vsel %vm220_vm3, %v219_v60, 0 }
 0x28d   :  { %1780 = vmatpush3.bf16.xpose.msra.mxu1 %v225_v61  ;;  %v269_v62 = vpop.permute.xlu1 %268 }
 0x28e   :  { %1785 = vmatprep.subr.bf16.mxu1 %v2040_v40  ;;  %v274_v63 = vsel %vm220_vm3, %v269_v62, 0 }
 0x294   :  { %1782 = vmatmul.mubr.msk.bf16.vlgmr.msra.gmra.mrb[4].mxu1 %vm220_vm3, %v2189_v53 }
 0x295   :  { %1786 = vmatpush3.bf16.xpose.msra.mxu1 %v274_v63  ;;  %1787 = vmatprep.mubr.msk.bf16.mxu1 %vm2041_vm1, %v2040_v40 }
 0x296   :  { %1797 = vmatprep.subr.bf16.mxu1 %v2040_v40 }
 0x29c   :  { %1788 = vmatmul.mubr.msk.bf16.vlgmr.msra.gmra.mrb[8].mxu1 %vm220_vm3, %v2193_v58 }
 0x29d   :  { %1798 = vmatpush3.bf16.msra.mxu1 %v392_v3  ;;  %1799 = vmatprep.mubr.msk.bf16.mxu1 %vm2041_vm1, %v2040_v40 }
 0x29e   :  { %1809 = vmatprep.subr.bf16.mxu1 %v2040_v40 }
 0x367   :  { %v261_v4 = vpop.f32.mrb[4].mxu1 }
 0x368   :  { %v1783_v5 = vpop.f32.mrb[5].mxu1  ;;  %v317_v6 = vsel %vm316_vm4, %v261_v4, -inf }
 0x369   :  { %318 = vmax.xlane.f32.xlu1 %v317_v6  ;;  %v264_v7 = vpop.f32.mrb[6].mxu1 }
 0x36a   :  { %v1784_v8 = vpop.f32.mrb[7].mxu1 }
 0x36f   :  { %v310_v9 = vpop.f32.mrb[8].mxu1 }
 0x370   :  { %v1789_v10 = vpop.f32.mrb[9].mxu1  ;;  %v320_v11 = vsel %vm316_vm4, %v310_v9, -inf }
 0x371   :  { %321 = vmax.xlane.f32.xlu0 %v320_v11  ;;  %v313_v12 = vpop.f32.mrb[10].mxu1 }
 0x372   :  { %v1790_v13 = vpop.f32.mrb[11].mxu1 }
 0x37a   :  { %486 = vrot.lane.b32.xlu1 %v2193_v58, %s2043_s4 }
 0x3f6   :  { %v319_v14 = vpop.xlane.xlu1 %318 }
 0x3f7   :  { %v323_v15 = vsub.f32 %v261_v4, %v319_v14 }
 0x3f9   :  { %v325_v16 = vmul.f32 1.442695, %v323_v15 }
 0x3fa   :  { %v487_v26 = vpop.permute.xlu1 %486 }
 0x3fb   :  { %1963 = vpow2.f32 %v325_v16  ;;  %v492_v37 = vsel %vm220_vm3, %v487_v26, 0 }
 0x3fe   :  { %v322_v17 = vpop.xlane.xlu0 %321 }
 0x3ff   :  { %v324_v18 = vsub.f32 %v310_v9, %v322_v17 }
 0x401   :  { %v327_v19 = vmul.f32 1.442695, %v324_v18 }
 0x403   :  { %1965 = vpow2.f32 %v327_v19 }
 0x405   :  { %v1964_v20 = vpop.eup %1963 }
 0x406   :  { %v329_v21 = vsel %vm316_vm4, %v1964_v20, 0.0 }
 0x407   :  { %330 = vadd.xlane.f32.xlu0 %v329_v21 }
 0x40d   :  { %v1966_v23 = vpop.eup %1965 }
 0x40e   :  { %v332_v24 = vsel %vm316_vm4, %v1966_v23, 0.0 }
 0x40f   :  { %333 = vadd.xlane.f32.xlu1 %v332_v24 }
 0x41d   :  { %436 = vrot.lane.b32.xlu0 %v2189_v53, %s2043_s4 }
 0x420   :  { %434 = vrot.lane.b32.xlu1 %v2189_v53, %s2044_s30 }
 0x424   :  { %484 = vrot.lane.b32.xlu1 %v2193_v58, %s2044_s30 }
 0x494   :  { %v331_v25 = vpop.xlane.xlu0 %330 }
 0x495   :  { %1967 = vrcp.f32 %v331_v25 }
 0x498   :  { %v437_v30 = vpop.permute.xlu0 %436 }
 0x499   :  { %v442_v32 = vsel %vm220_vm3, %v437_v30, 0 }
 0x49c   :  { %v334_v27 = vpop.xlane.xlu1 %333 }
 0x49d   :  { %1969 = vrcp.f32 %v334_v27 }
 0x49f   :  { %v1968_v28 = vpop.eup %1967 }
 0x4a0   :  { %v337_v29 = vmul.f32 %v1968_v28, %v1964_v20  ;;  %v435_v36 = vpop.permute.xlu1 %434 }
 0x4a2   :  { %v339_v31 = vpack.c.bf16 %v337_v29, %v337_v29 }
 0x4a4   :  { %1794 = vmatmul.mubr.msk.bf16.vlgmr.msra.gmra.mrb[0].mxu0 %vm316_vm4, %v339_v31  ;;  %v485_v38 = vpop.permute.xlu1 %484 }
 0x4a5   :  { %1804 = vmatpush3.bf16.xpose.msra.mxu0 %v442_v32  ;;  %1805 = vmatprep.mubr.msk.bf16.mxu0 %vm2041_vm1, %v2040_v40 }
 0x4a6   :  { %1815 = vmatprep.subr.bf16.mxu0 %v2040_v40 }
 0x4a7   :  { %v1970_v33 = vpop.eup %1969 }
 0x4a8   :  { %v338_v34 = vmul.f32 %v1970_v33, %v1966_v23 }
 0x4aa   :  { %v340_v35 = vpack.c.bf16 %v338_v34, %v338_v34 }
 0x4ac   :  { %1800 = vmatmul.mubr.msk.bf16.vlgmr.msra.gmra.mrb[12].mxu1 %vm316_vm4, %v340_v35  ;;  %1806 = vmatmul.mubr.msk.bf16.vlgmr.msra.gmra.mrb[4].mxu0 %vm220_vm3, %v435_v36 }
 0x4ad   :  { %1810 = vmatpush3.bf16.xpose.msra.mxu1 %v492_v37  ;;  %1811 = vmatprep.mubr.msk.bf16.mxu1 %vm2041_vm1, %v2040_v40 }
 0x4ae   :  { %1821 = vmatprep.subr.bf16.mxu1 %v2040_v40  ;;  %1817 = vmatprep.mubr.msk.bf16.mxu0 %vm2041_vm1, %v2040_v40 }
 0x4b4   :  { %1812 = vmatmul.mubr.msk.bf16.vlgmr.msra.gmra.mrb[16].mxu1 %vm220_vm3, %v485_v38 }
 0x4b5   :  { %1823 = vmatprep.mubr.msk.bf16.mxu1 %vm2041_vm1, %v2040_v40 }
 0x577   :  { %v2245_v39 = vpop.f32.mrb[0].mxu0 }
 0x578   :  { %v1795_v41 = vpop.f32.mrb[1].mxu0 }
 0x579   :  { %v385_v44 = vpop.f32.mrb[2].mxu0 }
 0x57a   :  { %v1796_v46 = vpop.f32.mrb[3].mxu0 }
 0x57f   :  { %v2247_v47 = vpop.f32.mrb[12].mxu1  ;;  %v478_v48 = vpop.f32.mrb[4].mxu0 }
 0x580   :  { %v1801_v49 = vpop.f32.mrb[13].mxu1  ;;  %v1807_v50 = vpop.f32.mrb[5].mxu0  ;;  %v534_v51 = vsel %vm316_vm4, %v478_v48, -inf }
 0x581   :  { %535 = vmax.xlane.f32.xlu0 %v534_v51  ;;  %v431_v52 = vpop.f32.mrb[14].mxu1  ;;  %v481_v54 = vpop.f32.mrb[6].mxu0 }
 0x582   :  { %v1802_v55 = vpop.f32.mrb[15].mxu1  ;;  %v1808_v57 = vpop.f32.mrb[7].mxu0 }
 0x587   :  { %v528_v59 = vpop.f32.mrb[16].mxu1 }
 0x588   :  { %v1813_v60 = vpop.f32.mrb[17].mxu1  ;;  %v537_v61 = vsel %vm316_vm4, %v528_v59, -inf }
 0x589   :  { %538 = vmax.xlane.f32.xlu1 %v537_v61  ;;  %v531_v62 = vpop.f32.mrb[18].mxu1 }
 0x58a   :  { %v1814_v63 = vpop.f32.mrb[19].mxu1 }
 0x59a   :  { %608 = vrot.lane.b32.xlu1 %v2208_v2, %s2044_s30 }
 0x59e   :  { %658 = vrot.lane.b32.xlu1 %v2189_v53, %s2045_s14 }
 0x5a2   :  { %708 = vrot.lane.b32.xlu1 %v2193_v58, %s2045_s14 }
 0x5a6   :  { %706 = vrot.lane.b32.xlu1 %v2193_v58, %s2046_s15 }
 0x60e   :  { %v536_v3 = vpop.xlane.xlu0 %535 }
 0x60f   :  { %v540_v4 = vsub.f32 %v478_v48, %v536_v3 }
 0x611   :  { %v542_v5 = vmul.f32 1.442695, %v540_v4 }
 0x613   :  { %1971 = vpow2.f32 %v542_v5 }
 0x616   :  { %v539_v6 = vpop.xlane.xlu1 %538 }
 0x617   :  { %v541_v7 = vsub.f32 %v528_v59, %v539_v6 }
 0x619   :  { %v544_v8 = vmul.f32 1.442695, %v541_v7 }
 0x61a   :  { %v609_v9 = vpop.permute.xlu1 %608 }
 0x61b   :  { %1973 = vpow2.f32 %v544_v8  ;;  %v614_v10 = vsel %vm344_vm2, %v609_v9, 0 }
 0x61c   :  { %1822 = vmatpush3.bf16.msra.mxu1 %v614_v10 }
 0x61d   :  { %v1972_v11 = vpop.eup %1971  ;;  %1833 = vmatprep.subr.bf16.mxu1 %v2040_v40 }
 0x61e   :  { %v546_v12 = vsel %vm316_vm4, %v1972_v11, 0.0  ;;  %v659_v23 = vpop.permute.xlu1 %658 }
 0x61f   :  { %547 = vadd.xlane.f32.xlu0 %v546_v12  ;;  %v664_v27 = vsel %vm220_vm3, %v659_v23, 0 }
 0x622   :  { %v709_v26 = vpop.permute.xlu1 %708 }
 0x623   :  { %v714_v29 = vsel %vm220_vm3, %v709_v26, 0 }
 0x625   :  { %v1974_v13 = vpop.eup %1973 }
 0x626   :  { %v549_v14 = vsel %vm316_vm4, %v1974_v13, 0.0  ;;  %v707_v31 = vpop.permute.xlu1 %706 }
 0x627   :  { %550 = vadd.xlane.f32.xlu0 %v549_v14 }
 0x63d   :  { %559 = vrot.lane.b32.xlu0 %v2191_v56, %s2044_s30 }
 0x641   :  { %656 = vrot.lane.b32.xlu0 %v2189_v53, %s2046_s15 }
 0x6ac   :  { %v548_v15 = vpop.xlane.xlu0 %547 }
 0x6ad   :  { %1975 = vrcp.f32 %v548_v15 }
 0x6b4   :  { %v551_v16 = vpop.xlane.xlu0 %550 }
 0x6b5   :  { %1977 = vrcp.f32 %v551_v16 }
 0x6b7   :  { %v1976_v17 = vpop.eup %1975 }
 0x6b8   :  { %v554_v18 = vmul.f32 %v1976_v17, %v1972_v11  ;;  %v560_v19 = vpop.permute.xlu0 %559 }
 0x6b9   :  { %v565_v20 = vsel %vm344_vm2, %v560_v19, 0 }
 0x6ba   :  { %1816 = vmatpush3.bf16.msra.mxu0 %v565_v20  ;;  %v556_v21 = vpack.c.bf16 %v554_v18, %v554_v18 }
 0x6bb   :  { %1827 = vmatprep.subr.bf16.mxu0 %v2040_v40 }
 0x6bc   :  { %v657_v30 = vpop.permute.xlu0 %656 }
 0x6bd   :  { %1818 = vmatmul.mubr.msk.bf16.vlgmr.msra.gmra.mrb[8].mxu0 %vm316_vm4, %v556_v21 }
 0x6be   :  { %1829 = vmatprep.mubr.msk.bf16.mxu0 %vm2041_vm1, %v2040_v40 }
 0x6bf   :  { %v1978_v24 = vpop.eup %1977 }
 0x6c0   :  { %v555_v25 = vmul.f32 %v1978_v24, %v1974_v13 }
 0x6c2   :  { %v557_v28 = vpack.c.bf16 %v555_v25, %v555_v25 }
 0x6c3   :  { %1828 = vmatpush3.bf16.xpose.msra.mxu0 %v664_v27 }
 0x6c4   :  { %1824 = vmatmul.mubr.msk.bf16.vlgmr.msra.gmra.mrb[20].mxu1 %vm316_vm4, %v557_v28  ;;  %1839 = vmatprep.subr.bf16.mxu0 %v2040_v40 }
 0x6c5   :  { %1834 = vmatpush3.bf16.xpose.msra.mxu1 %v714_v29  ;;  %1835 = vmatprep.mubr.msk.bf16.mxu1 %vm2041_vm1, %v2040_v40 }
 0x6c6   :  { %1845 = vmatprep.subr.bf16.mxu1 %v2040_v40 }
 0x6ca   :  { %1830 = vmatmul.mubr.msk.bf16.vlgmr.msra.gmra.mrb[12].mxu0 %vm220_vm3, %v657_v30 }
 0x6cb   :  { %1841 = vmatprep.mubr.msk.bf16.mxu0 %vm2041_vm1, %v2040_v40 }
 0x6cc   :  { %1836 = vmatmul.mubr.msk.bf16.vlgmr.msra.gmra.mrb[24].mxu1 %vm220_vm3, %v707_v31 }
 0x6cd   :  { %1847 = vmatprep.mubr.msk.bf16.mxu1 %vm2041_vm1, %v2040_v40 }
 0x790   :  { %v2285_v32 = vpop.f32.mrb[8].mxu0 }
 0x791   :  { %v1819_v33 = vpop.f32.mrb[9].mxu0 }
 0x792   :  { %v604_v34 = vpop.f32.mrb[10].mxu0 }
 0x793   :  { %v1820_v35 = vpop.f32.mrb[11].mxu0 }
 0x797   :  { %v2287_v36 = vpop.f32.mrb[20].mxu1 }
 0x798   :  { %v1900_v37 = vpack.i.bf16 %v2287_v36, %v2285_v32  ;;  %v1825_v38 = vpop.f32.mrb[21].mxu1 }
 0x799   :  { %v653_v41 = vpop.f32.mrb[22].mxu1 }
 0x79a   :  { %v1826_v44 = vpop.f32.mrb[23].mxu1 }
 0x79d   :  { %v700_v46 = vpop.f32.mrb[12].mxu0 }
 0x79e   :  { %v1831_v48 = vpop.f32.mrb[13].mxu0  ;;  %v756_v49 = vsel %vm316_vm4, %v700_v46, -inf }
 0x79f   :  { %757 = vmax.xlane.f32.xlu0 %v756_v49  ;;  %v703_v50 = vpop.f32.mrb[14].mxu0  ;;  %v750_v51 = vpop.f32.mrb[24].mxu1 }
 0x7a0   :  { %v1832_v52 = vpop.f32.mrb[15].mxu0  ;;  %v1837_v54 = vpop.f32.mrb[25].mxu1  ;;  %v759_v55 = vsel %vm316_vm4, %v750_v51, -inf }
 0x7a1   :  { %760 = vmax.xlane.f32.xlu1 %v759_v55  ;;  %v753_v57 = vpop.f32.mrb[26].mxu1 }
 0x7a2   :  { %v1838_v59 = vpop.f32.mrb[27].mxu1 }
 0x7b2   :  { %828 = vrot.lane.b32.xlu1 %v2208_v2, %s2046_s15 }
 0x7b6   :  { %878 = vrot.lane.b32.xlu1 %v2189_v53, %s2047_s16 }
 0x7ba   :  { %928 = vrot.lane.b32.xlu1 %v2193_v58, %s2047_s16 }
 0x7be   :  { %926 = vrot.lane.b32.xlu1 %v2193_v58, %s2048_s17 }
 0x82c   :  { %v758_v60 = vpop.xlane.xlu0 %757 }
 0x82d   :  { %v762_v61 = vsub.f32 %v700_v46, %v758_v60 }
 0x82e   :  { %v761_v62 = vpop.xlane.xlu1 %760 }
 0x82f   :  { %v764_v63 = vmul.f32 1.442695, %v762_v61  ;;  %v763_v3 = vsub.f32 %v750_v51, %v761_v62 }
 0x831   :  { %1979 = vpow2.f32 %v764_v63  ;;  %v766_v4 = vmul.f32 1.442695, %v763_v3 }
 0x832   :  { %v829_v5 = vpop.permute.xlu1 %828 }
 0x833   :  { %1981 = vpow2.f32 %v766_v4  ;;  %v834_v6 = vsel %vm344_vm2, %v829_v5, 0 }
 0x834   :  { %1846 = vmatpush3.bf16.msra.mxu1 %v834_v6 }
 0x835   :  { %1857 = vmatprep.subr.bf16.mxu1 %v2040_v40 }
 0x836   :  { %v879_v15 = vpop.permute.xlu1 %878 }
 0x83a   :  { %v929_v20 = vpop.permute.xlu1 %928 }
 0x83b   :  { %v1980_v7 = vpop.eup %1979  ;;  %v934_v23 = vsel %vm220_vm3, %v929_v20, 0 }
 0x83c   :  { %v768_v8 = vsel %vm316_vm4, %v1980_v7, 0.0 }
 0x83d   :  { %v1982_v9 = vpop.eup %1981  ;;  %769 = vadd.xlane.f32.xlu0 %v768_v8 }
 0x83e   :  { %v771_v58 = vsel %vm316_vm4, %v1982_v9, 0.0  ;;  %v927_v25 = vpop.permute.xlu1 %926 }
 0x841   :  { %772 = vadd.xlane.f32.xlu0 %v771_v58 }
 0x857   :  { %780 = vrot.lane.b32.xlu0 %v2191_v56, %s2046_s15 }
 0x85b   :  { %876 = vrot.lane.b32.xlu0 %v2189_v53, %s2048_s17  ;;  %v884_v53 = vsel %vm220_vm3, %v879_v15, 0 }
 0x8ca   :  { %v770_v10 = vpop.xlane.xlu0 %769 }
 0x8cb   :  { %1983 = vrcp.f32 %v770_v10 }
 0x8ce   :  { %v773_v11 = vpop.xlane.xlu0 %772 }
 0x8cf   :  { %1985 = vrcp.f32 %v773_v11 }
 0x8d2   :  { %v781_v12 = vpop.permute.xlu0 %780 }
 0x8d3   :  { %v786_v13 = vsel %vm344_vm2, %v781_v12, 0  ;;  %v1927_v12 = vld [vmem:[%s2528_s5] sm:$0xff]  }
 0x8d4   :  { %1840 = vmatpush3.bf16.msra.mxu0 %v786_v13  ;;  %v1928_v13 = vld [vmem:[%s2528_s5 + $0x8] sm:$0xff]  }
 0x8d5   :  { %v1984_v14 = vpop.eup %1983  ;;  %1851 = vmatprep.subr.bf16.mxu0 %v2040_v40 }
 0x8d6   :  { %v776_v16 = vmul.f32 %v1984_v14, %v1980_v7  ;;  %v877_v24 = vpop.permute.xlu0 %876  ;;  %v1929_v14 = vld [vmem:[%s2528_s5 + $0x10] sm:$0xff]  }
 0x8d8   :  { %v778_v17 = vpack.c.bf16 %v776_v16, %v776_v16 }
 0x8d9   :  { %v1986_v18 = vpop.eup %1985 }
 0x8da   :  { %v777_v19 = vmul.f32 %v1986_v18, %v1982_v9  ;;  %1842 = vmatmul.mubr.msk.bf16.vlgmr.msra.gmra.mrb[16].mxu0 %vm316_vm4, %v778_v17 }
 0x8db   :  { %1853 = vmatprep.mubr.msk.bf16.mxu0 %vm2041_vm1, %v2040_v40 }
 0x8dc   :  { %v779_v21 = vpack.c.bf16 %v777_v19, %v777_v19 }
 0x8dd   :  { %1852 = vmatpush3.bf16.xpose.msra.mxu0 %v884_v53 }
 0x8de   :  { %1848 = vmatmul.mubr.msk.bf16.vlgmr.msra.gmra.mrb[28].mxu1 %vm316_vm4, %v779_v21  ;;  %1863 = vmatprep.subr.bf16.mxu0 %v2040_v40 }
 0x8df   :  { %1858 = vmatpush3.bf16.xpose.msra.mxu1 %v934_v23  ;;  %1859 = vmatprep.mubr.msk.bf16.mxu1 %vm2041_vm1, %v2040_v40 }
 0x8e0   :  { %1869 = vmatprep.subr.bf16.mxu1 %v2040_v40 }
 0x8e4   :  { %1854 = vmatmul.mubr.msk.bf16.vlgmr.msra.gmra.mrb[20].mxu0 %vm220_vm3, %v877_v24 }
 0x8e5   :  { %1865 = vmatprep.mubr.msk.bf16.mxu0 %vm2041_vm1, %v2040_v40 }
 0x8e6   :  { %1860 = vmatmul.mubr.msk.bf16.vlgmr.msra.gmra.mrb[32].mxu1 %vm220_vm3, %v927_v25 }
 0x8e7   :  { %1871 = vmatprep.mubr.msk.bf16.mxu1 %vm2041_vm1, %v2040_v40 }
 0x9ad   :  { %v822_v26 = vpop.f32.mrb[16].mxu0 }
 0x9ae   :  { %v1843_v27 = vpop.f32.mrb[17].mxu0 }
 0x9af   :  { %v825_v28 = vpop.f32.mrb[18].mxu0 }
 0x9b0   :  { %v1844_v29 = vpop.f32.mrb[19].mxu0 }
 0x9b1   :  { %v870_v30 = vpop.f32.mrb[28].mxu1 }
 0x9b2   :  { %v1905_v31 = vpack.i.bf16 %v870_v30, %v822_v26  ;;  %v1849_v33 = vpop.f32.mrb[29].mxu1 }
 0x9b3   :  { %v873_v34 = vpop.f32.mrb[30].mxu1 }
 0x9b4   :  { %v1850_v35 = vpop.f32.mrb[31].mxu1 }
 0x9b7   :  { %v920_v38 = vpop.f32.mrb[20].mxu0 }
 0x9b8   :  { %v1855_v41 = vpop.f32.mrb[21].mxu0  ;;  %v976_v44 = vsel %vm316_vm4, %v920_v38, -inf }
 0x9b9   :  { %977 = vmax.xlane.f32.xlu0 %v976_v44  ;;  %v923_v46 = vpop.f32.mrb[22].mxu0  ;;  %v970_v48 = vpop.f32.mrb[32].mxu1 }
 0x9ba   :  { %v1856_v49 = vpop.f32.mrb[23].mxu0  ;;  %v1861_v50 = vpop.f32.mrb[33].mxu1  ;;  %v979_v51 = vsel %vm316_vm4, %v970_v48, -inf }
 0x9bb   :  { %980 = vmax.xlane.f32.xlu1 %v979_v51  ;;  %v973_v52 = vpop.f32.mrb[34].mxu1 }
 0x9bc   :  { %v1862_v54 = vpop.f32.mrb[35].mxu1 }
 0x9cc   :  { %1048 = vrot.lane.b32.xlu1 %v2208_v2, %s2048_s17 }
 0x9d0   :  { %1901 = vrot.lane.b32.xlu1 %v1900_v37, %s2047_s16 }
 0x9d4   :  { %1906 = vrot.lane.b32.xlu1 %v1905_v31, %s2045_s14 }
 0xa46   :  { %v978_v55 = vpop.xlane.xlu0 %977 }
 0xa47   :  { %v982_v57 = vsub.f32 %v920_v38, %v978_v55 }
 0xa48   :  { %v981_v59 = vpop.xlane.xlu1 %980 }
 0xa49   :  { %v984_v60 = vmul.f32 1.442695, %v982_v57  ;;  %v983_v61 = vsub.f32 %v970_v48, %v981_v59  ;;  %v1686_v48 = vld [vmem:[%s2529_s6] ss:$0 sm:$0xff]  ;;  %s2049_s6 = smov [#allocation2]  }
 0xa4a   :  { %s1648_s27 = sshll.u32 %s2049_s6, 4  ;;  %s1649_s27 = int_to_ptr.vmem [resolvable:$true] %s1648_s27 }
 0xa4b   :  { %1987 = vpow2.f32 %v984_v60  ;;  %v986_v62 = vmul.f32 1.442695, %v983_v61  ;;  %s2015_s28 = scalar_lea.vmem %s1649_s27, 256  ;;  %p2020_p1 = scmp.lt.s32.totalorder %s1649_s27, %s1649_s27 }
 0xa4c   :  { %v1049_v63 = vpop.permute.xlu1 %1048  ;;  %p2016_p0 = scmp.ne.s32.totalorder %s1649_s27, %s2015_s28  ;;  %p2021_p2 = scmp.lt.s32.totalorder %s2015_s28, %s2015_s28 }
 0xa4d   :  { %1989 = vpow2.f32 %v986_v62  ;;  %v1054_v3 = vsel %vm344_vm2, %v1049_v63, 0 }
 0xa4e   :  { %1870 = vmatpush3.bf16.msra.mxu1 %v1054_v3  ;;  %p2022_p3 = por %p2021_p2, %p2020_p1 }
 0xa50   :  { %v1902_v24 = vpop.permute.xlu1 %1901  ;;  %p2023_p4 = pnand %p2022_p3, %p2016_p0 }
 0xa51   :  { %v1904_v26 = vunpack.i.h.bf16 %v1902_v24 }
 0xa53   :  { %v1121_v30 = vsel %vm220_vm3, %v2247_v47, %v1904_v26  ;;  %v1944_v26 = vld [vmem:[%s2534_s11] sm:$0xff]  }
 0xa54   :  { %v1907_v25 = vpop.permute.xlu1 %1906 }
 0xa55   :  { %v1988_v2 = vpop.eup %1987  ;;  %v1909_v27 = vunpack.i.h.bf16 %v1907_v25  ;;  %v1908_v28 = vunpack.i.l.bf16 %v1907_v25  ;;  %v1943_v25 = vld [vmem:[%s2534_s11 + $0x40] sm:$0xff]  }
 0xa56   :  { %v988_v4 = vsel %vm316_vm4, %v1988_v2, 0.0 }
 0xa57   :  { %v1990_v5 = vpop.eup %1989  ;;  %989 = vadd.xlane.f32.xlu0 %v988_v4  ;;  %v1124_v38 = vsel %vm1122_vm5, %v1121_v30, %v1909_v27  ;;  %v1946_v27 = vld [vmem:[%s2534_s11 + $0x8] sm:$0xff]   ;;  %v1949_v30 = vld [vmem:[%s2534_s11 + $0x58] sm:$0xff]  }
 0xa58   :  { %v991_v32 = vsel %vm316_vm4, %v1990_v5, 0.0 }
 0xa5b   :  { %992 = vadd.xlane.f32.xlu0 %v991_v32  ;;  %v1933_v32 = vld [vmem:[%s2532_s9 + $0x4] ss:$8 sps:$4 sm:$0xff]  }
 0xa5c   :  { %1311 = vmatprep.subr.bf16.mxu1 %v1933_v32 }
 0xa71   :  { %1000 = vrot.lane.b32.xlu0 %v2191_v56, %s2048_s17 }
 0xae4   :  { %v990_v36 = vpop.xlane.xlu0 %989 }
 0xae5   :  { %1991 = vrcp.f32 %v990_v36  ;;  %v1931_v36 = vld [vmem:[%s2532_s9] ss:$8 sps:$4 sm:$0xff]  }
 0xae8   :  { %v993_v37 = vpop.xlane.xlu0 %992 }
 0xae9   :  { %1993 = vrcp.f32 %v993_v37  ;;  %v1936_v37 = vld [vmem:[%s2532_s9 + $0x14] ss:$8 sps:$4 sm:$0xff]  }
 0xaec   :  { %v1001_v6 = vpop.permute.xlu0 %1000 }
 0xaed   :  { %v1006_v7 = vsel %vm344_vm2, %v1001_v6, 0  ;;  %v1934_v6 = vld [vmem:[%s2532_s9 + $0x10] ss:$8 sps:$4 sm:$0xff]  }
 0xaee   :  { %1864 = vmatpush3.bf16.msra.mxu0 %v1006_v7  ;;  %v1939_v7 = vld [vmem:[%s2532_s9 + $0x24] ss:$8 sps:$4 sm:$0xff]  }
 0xaef   :  { %v1992_v8 = vpop.eup %1991  ;;  %1875 = vmatprep.subr.bf16.mxu0 %v2040_v40 }
 0xaf0   :  { %v996_v9 = vmul.f32 %v1992_v8, %v1988_v2  ;;  %v1937_v8 = vld [vmem:[%s2532_s9 + $0x20] ss:$8 sps:$4 sm:$0xff]  }
 0xaf2   :  { %v998_v58 = vpack.c.bf16 %v996_v9, %v996_v9  ;;  %v1940_v9 = vld [vmem:[%s2532_s9 + $0x30] ss:$8 sps:$4 sm:$0xff]  }
 0xaf3   :  { %v1994_v10 = vpop.eup %1993 }
 0xaf4   :  { %v997_v11 = vmul.f32 %v1994_v10, %v1990_v5  ;;  %1866 = vmatmul.mubr.msk.bf16.vlgmr.msra.gmra.mrb[24].mxu0 %vm316_vm4, %v998_v58  ;;  %v1942_v58 = vld [vmem:[%s2532_s9 + $0x34] ss:$8 sps:$4 sm:$0xff]  }
 0xaf5   :  { %1883 = vmatprep.mubr.msk.bf16.mxu0 %vm2041_vm1, %v2040_v40  ;;  %1876 = vmatpush3.bf16.msra.mxu0 %v1927_v12 }
 0xaf6   :  { %v999_v56 = vpack.c.bf16 %v997_v11, %v997_v11  ;;  %1877 = vmatprep.subr.bf16.mxu0 %v2040_v40 }
 0xaf8   :  { %1872 = vmatmul.mubr.msk.bf16.vlgmr.msra.gmra.mrb[36].mxu1 %vm316_vm4, %v999_v56 }
 0xaf9   :  { %1343 = vmatprep.mubr.bf16.mxu1 %v2039_v22  ;;  %1878 = vmatpush3.bf16.msra.mxu0 %v1928_v13  ;;  %v1930_v22 = vld [vmem:[%s2528_s5 + $0x18] sm:$0xff]  }
 0xafa   :  { %1879 = vmatprep.subr.bf16.mxu0 %v2040_v40  ;;  %1312 = vmatpush1.bf16.msra.mxu1 %v1931_v36 }
 0xafb   :  { %1313 = vmatprep.subr.bf16.mxu1 %v1936_v37 }
 0xafd   :  { %1880 = vmatpush3.bf16.msra.mxu0 %v1929_v14 }
 0xafe   :  { %1881 = vmatprep.subr.bf16.mxu0 %v2040_v40  ;;  %v1903_v40 = vunpack.i.l.bf16 %v1902_v24  ;;  %1314 = vmatpush1.bf16.msra.mxu1 %v1934_v6 }
 0xaff   :  { %1315 = vmatprep.subr.bf16.mxu1 %v1939_v7 }
 0xb00   :  { %v1120_v31 = vsel %vm220_vm3, %v2245_v39, %v1903_v40  ;;  %v1945_v40 = vld [vmem:[%s2534_s11 + $0x48] sm:$0xff]  }
 0xb01   :  { %1882 = vmatpush3.bf16.msra.mxu0 %v1930_v22  ;;  %v1123_v35 = vsel %vm1122_vm5, %v1120_v31, %v1908_v28  ;;  %v1947_v28 = vld [vmem:[%s2534_s11 + $0x50] sm:$0xff]   ;;  %v1950_v31 = vld [vmem:[%s2534_s11 + $0x18] sm:$0xff]  }
 0xb02   :  { %1316 = vmatpush1.bf16.msra.mxu1 %v1937_v8  ;;  %1757 = vmatprep.subr.bf16.mxu0 %v1943_v25 }
 0xb03   :  { %1317 = vmatprep.subr.bf16.mxu1 %v1942_v58 }
 0xb06   :  { %1318 = vmatpush1.bf16.msra.mxu1 %v1940_v9 }
 0xbc7   :  { %v1042_v15 = vpop.f32.mrb[24].mxu0 }
 0xbc8   :  { %v1867_v16 = vpop.f32.mrb[25].mxu0 }
 0xbc9   :  { %v1045_v17 = vpop.f32.mrb[26].mxu0  ;;  %v1692_v16 = vld [vmem:[%s2530_s7] ss:$0 sm:$0xff] }
 0xbca   :  { %v1868_v18 = vpop.f32.mrb[27].mxu0 }
 0xbcb   :  { %v1090_v19 = vpop.f32.mrb[36].mxu1 }
 0xbcc   :  { %v1910_v20 = vpack.i.bf16 %v1090_v19, %v1042_v15  ;;  %v1873_v53 = vpop.f32.mrb[37].mxu1 }
 0xbcd   :  { %v1093_v21 = vpop.f32.mrb[38].mxu1 }
 0xbce   :  { %1911 = vrot.lane.b32.xlu0 %v1910_v20, %s2043_s4  ;;  %v1874_v23 = vpop.f32.mrb[39].mxu1  ;;  %v1693_v20 = vld [vmem:[%s2531_s8] ss:$0 sm:$0xff] }
 0xc40   :  { %v1912_v29 = vpop.permute.xlu0 %1911 }
 0xc41   :  { %v1914_v33 = vunpack.i.h.bf16 %v1912_v29  ;;  %v1913_v34 = vunpack.i.l.bf16 %v1912_v29  ;;  %v1948_v29 = vld [vmem:[%s2534_s11 + $0x10] sm:$0xff]  }
 0xc43   :  { %v1127_v41 = vsel %vm1125_vm6, %v1124_v38, %v1914_v33  ;;  %v1126_v44 = vsel %vm1125_vm6, %v1123_v35, %v1913_v34  ;;  %v1951_v33 = vld [vmem:[%s2534_s11 + $0x60] sm:$0xff]   ;;  %v1953_v35 = vld [vmem:[%s2534_s11 + $0x68] sm:$0xff]  }
 0xc44   :  { %v1128_v46 = vpack.c.bf16 %v1127_v41, %v1126_v44  ;;  %v1952_v34 = vld [vmem:[%s2534_s11 + $0x20] sm:$0xff]   ;;  %v1954_v38 = vld [vmem:[%s2534_s11 + $0x28] sm:$0xff]   ;;  %v1955_v41 = vld [vmem:[%s2534_s11 + $0x70] sm:$0xff]  }
 0xc45   :  { %v1956_v44 = vld [vmem:[%s2534_s11 + $0x30] sm:$0xff]  }
 0xc46   :  { %1884 = vmatmul.mubr.msk.bf16.vlgmr.msra.gmra.mrb[28].mxu0 %vm71_vm0, %v1128_v46  ;;  %v1957_v46 = vld [vmem:[%s2534_s11 + $0x78] sm:$0xff]  }
 0xc47   :  { %1758 = vmatpush3.bf16.msra.mxu0 %v1944_v26 }
 0xc48   :  { %1759 = vmatprep.subr.bf16.mxu0 %v1945_v40 }
 0xc4b   :  { %1760 = vmatpush3.bf16.msra.mxu0 %v1946_v27 }
 0xc4c   :  { %1761 = vmatprep.subr.bf16.mxu0 %v1947_v28 }
 0xc4f   :  { %1762 = vmatpush3.bf16.msra.mxu0 %v1948_v29 }
 0xc50   :  { %1763 = vmatprep.subr.bf16.mxu0 %v1949_v30 }
 0xc53   :  { %1764 = vmatpush3.bf16.msra.mxu0 %v1950_v31 }
 0xc54   :  { %1765 = vmatprep.subr.bf16.mxu0 %v1951_v33 }
 0xc57   :  { %1766 = vmatpush3.bf16.msra.mxu0 %v1952_v34 }
 0xc58   :  { %1767 = vmatprep.subr.bf16.mxu0 %v1953_v35 }
 0xc5b   :  { %1768 = vmatpush3.bf16.msra.mxu0 %v1954_v38 }
 0xc5c   :  { %1769 = vmatprep.subr.bf16.mxu0 %v1955_v41 }
 0xc5f   :  { %1770 = vmatpush3.bf16.msra.mxu0 %v1956_v44 }
 0xc60   :  { %1771 = vmatprep.subr.bf16.mxu0 %v1957_v46 }
 0xd19   :  { %v1196_v49 = vpop.f32.mrb[28].mxu0 }
 0xd1a   :  { %v1197_v50 = vadd.f32 %v1686_v48, %v1196_v49  ;;  %v1885_v51 = vpop.f32.mrb[29].mxu0  ;;  %v1256_v49 = vld [vmem:[%s2533_s10] sm:$0x3] }
 0xd1b   :  { %v1199_v47 = vpop.f32.mrb[30].mxu0  ;;  %v1265_v51 = vrot.slane %v1256_v49, %v123_v45 }
 0xd1c   :  { %v2373_v52 = vadd.f32 %v1197_v50, %v2125_v0  ;;  %v1200_v39 = vadd.f32 %v1686_v48, %v1199_v47  ;;  %v1886_v54 = vpop.f32.mrb[31].mxu0  ;;  %v1958_v48 = vld [vmem:[%s2534_s11 + $0x38] sm:$0xff]   ;;  %v1261_v50 = vrot.slane %v1256_v49, %v119_v43 }
 0xd1d   :  { %1772 = vmatpush3.bf16.msra.mxu0 %v1958_v48 }
 0xd1e   :  { %v2376_v55 = vadd.f32 %v1200_v39, %v2130_v1  ;;  %v1205_v57 = vsel %vm71_vm0, %v2373_v52, 0.0 }
 0xd1f   :  { %1206 = vadd.xlane.f32.xlu1 %v1205_v57 }
 0xd20   :  { %v1208_v59 = vsel %vm71_vm0, %v2376_v55, 0.0 }
 0xd21   :  { %1209 = vadd.xlane.f32.xlu0 %v1208_v59 }
 0xdac   :  { %v1207_v60 = vpop.xlane.xlu1 %1206 }
 0xdad   :  { %v1211_v61 = vmul.f32 0.015625, %v1207_v60 }
 0xdae   :  { %v1210_v62 = vpop.xlane.xlu0 %1209 }
 0xdaf   :  { %v1213_v63 = vsub.f32 %v2373_v52, %v1211_v61  ;;  %v1212_v0 = vmul.f32 0.015625, %v1210_v62 }
 0xdb1   :  { %v1214_v3 = vsub.f32 %v2376_v55, %v1212_v0  ;;  %v1215_v2 = vmul.f32 %v1213_v63, %v1213_v63 }
 0xdb3   :  { %v1217_v1 = vsel %vm71_vm0, %v1215_v2, 0.0  ;;  %v1216_v4 = vmul.f32 %v1214_v3, %v1214_v3 }
 0xdb4   :  { %1218 = vadd.xlane.f32.xlu0 %v1217_v1 }
 0xdb5   :  { %v1220_v5 = vsel %vm71_vm0, %v1216_v4, 0.0 }
 0xdb8   :  { %1221 = vadd.xlane.f32.xlu0 %v1220_v5 }
 0xe41   :  { %v1219_v10 = vpop.xlane.xlu0 %1218 }
 0xe42   :  { %v1223_v11 = vmul.f32 0.015625, %v1219_v10 }
 0xe44   :  { %v1225_v56 = vadd.f32 1e-06, %v1223_v11 }
 0xe45   :  { %v1222_v12 = vpop.xlane.xlu0 %1221 }
 0xe46   :  { %1995 = vrsqrt.f32 %v1225_v56  ;;  %v1224_v13 = vmul.f32 0.015625, %v1222_v12 }
 0xe48   :  { %v1226_v14 = vadd.f32 1e-06, %v1224_v13 }
 0xe4a   :  { %1997 = vrsqrt.f32 %v1226_v14 }
 0xe50   :  { %v1996_v22 = vpop.eup %1995 }
 0xe51   :  { %v1229_v15 = vmul.f32 %v1996_v22, %v1213_v63 }
 0xe53   :  { %v1237_v18 = vmul.f32 %v1692_v16, %v1229_v15 }
 0xe54   :  { %v1998_v17 = vpop.eup %1997 }
 0xe55   :  { %v1230_v19 = vmul.f32 %v1998_v17, %v1214_v3  ;;  %v1245_v21 = vadd.f32 %v1693_v20, %v1237_v18 }
 0xe57   :  { %v1238_v53 = vmul.f32 %v1692_v16, %v1230_v19 }
 0xe59   :  { %v1246_v23 = vadd.f32 %v1693_v20, %v1238_v53 }
 0xe5b   :  { %v1247_v24 = vpack.c.bf16 %v1246_v23, %v1245_v21 }
 0xe5d   :  { %1702 = vmatmul.mubr.msk.bf16.vlgmr.msra.gmra.mrb[40].mxu1 %vm71_vm0, %v1247_v24 }
 0xf30   :  { %v1345_v47 = vpop.f32.mrb[40].mxu1 }
 0xf31   :  { %v2472_v39 = vadd.f32 %v1345_v47, %v1261_v50  ;;  %v1347_v54 = vpop.f32.mrb[41].mxu1 }
 0xf32   :  { %v2474_v57 = vadd.f32 %v1347_v54, %v1265_v51  ;;  %v1349_v59 = vpop.f32.mrb[42].mxu1 }
 0xf33   :  { %v2477_v60 = vmul.f32 0.70710677, %v2472_v39  ;;  %v2479_v61 = vadd.f32 %v1349_v59, %v1261_v50  ;;  %v1351_v62 = vpop.f32.mrb[43].mxu1 }
 0xf34   :  { %v2482_v63 = vmul.f32 0.70710677, %v2474_v57  ;;  %v2484_v43 = vadd.f32 %v1351_v62, %v1265_v51 }
 0xf35   :  { %v1358_v42 = vand.u32 2147483647, %v2477_v60  ;;  %v2488_v45 = vmul.f32 0.70710677, %v2479_v61  ;;  %vm1438_vm7 = vcmp.ge.f32.partialorder %v2477_v60, 0.0 }
 0xf36   :  { %v1359_v0 = vand.u32 2147483647, %v2482_v63  ;;  %v2492_v3 = vmul.f32 0.70710677, %v2484_v43  ;;  %vm1439_vm8 = vcmp.ge.f32.partialorder %v2482_v63, 0.0 }
 0xf37   :  { %v1362_v2 = vmul.f32 0.3275911, %v1358_v42  ;;  %v1360_v1 = vand.u32 2147483647, %v2488_v45  ;;  %v1414_v9 = vsub.f32 0.0, %v1358_v42  ;;  %vm1440_vm9 = vcmp.ge.f32.partialorder %v2488_v45, 0.0 }
 0xf38   :  { %v1363_v4 = vmul.f32 0.3275911, %v1359_v0  ;;  %v1361_v5 = vand.u32 2147483647, %v2492_v3  ;;  %v1415_v58 = vsub.f32 0.0, %v1359_v0  ;;  %vm1441_vm10 = vcmp.ge.f32.partialorder %v2492_v3, 0.0 }
 0xf39   :  { %v1366_v32 = vadd.f32 1.0, %v1362_v2  ;;  %v1364_v36 = vmul.f32 0.3275911, %v1360_v1  ;;  %v1418_v11 = vmul.f32 %v1414_v9, %v1358_v42  ;;  %v1416_v56 = vsub.f32 0.0, %v1360_v1 }
 0xf3a   :  { %v1367_v37 = vadd.f32 1.0, %v1363_v4  ;;  %v1365_v6 = vmul.f32 0.3275911, %v1361_v5  ;;  %v1419_v14 = vmul.f32 %v1415_v58, %v1359_v0  ;;  %v1417_v15 = vsub.f32 0.0, %v1361_v5 }
 0xf3b   :  { %1999 = vrcp.f32 %v1366_v32  ;;  %v1368_v7 = vadd.f32 1.0, %v1364_v36  ;;  %v1422_v18 = vmul.f32 1.442695, %v1418_v11  ;;  %v1420_v20 = vmul.f32 %v1416_v56, %v1360_v1 }
 0xf3c   :  { %2001 = vrcp.f32 %v1367_v37  ;;  %v1369_v8 = vadd.f32 1.0, %v1365_v6  ;;  %v1424_v21 = vmul.f32 1.442695, %v1419_v14  ;;  %v1421_v26 = vmul.f32 %v1417_v15, %v1361_v5 }
 0xf3d   :  { %2003 = vrcp.f32 %v1368_v7  ;;  %v1426_v30 = vmul.f32 1.442695, %v1420_v20 }
 0xf3e   :  { %2005 = vrcp.f32 %v1369_v8  ;;  %v1428_v38 = vmul.f32 1.442695, %v1421_v26  ;;  %v1452_v26 = vmul.f32 0.5, %v2479_v61  ;;  %v1703_v61 = vld [vmem:[%s2535_s12] ss:$0 sm:$0xff] }
 0xf3f   :  { %2007 = vpow2.f32 %v1422_v18 }
 0xf40   :  { %2009 = vpow2.f32 %v1424_v21 }
 0xf41   :  { %2011 = vpow2.f32 %v1426_v30 }
 0xf42   :  { %2013 = vpow2.f32 %v1428_v38 }
 0xf45   :  { %v2000_v10 = vpop.eup %1999 }
 0xf46   :  { %v2002_v12 = vpop.eup %2001  ;;  %v1378_v13 = vmul.f32 1.0614054, %v2000_v10 }
 0xf47   :  { %v1379_v22 = vmul.f32 1.0614054, %v2002_v12  ;;  %v2004_v17 = vpop.eup %2003 }
 0xf48   :  { %v1382_v16 = vadd.f32 -1.4531521, %v1378_v13  ;;  %v1380_v23 = vmul.f32 1.0614054, %v2004_v17  ;;  %v2006_v24 = vpop.eup %2005 }
 0xf49   :  { %v1383_v19 = vadd.f32 -1.4531521, %v1379_v22  ;;  %v1381_v28 = vmul.f32 1.0614054, %v2006_v24  ;;  %v2008_v4 = vpop.eup %2007 }
 0xf4a   :  { %v1386_v53 = vmul.f32 %v2000_v10, %v1382_v16  ;;  %v1384_v27 = vadd.f32 -1.4531521, %v1380_v23  ;;  %v2010_v32 = vpop.eup %2009 }
 0xf4b   :  { %v1387_v25 = vmul.f32 %v2002_v12, %v1383_v19  ;;  %v1385_v34 = vadd.f32 -1.4531521, %v1381_v28  ;;  %v2012_v11 = vpop.eup %2011 }
 0xf4c   :  { %v1390_v40 = vadd.f32 1.4214138, %v1386_v53  ;;  %v1388_v33 = vmul.f32 %v2004_v17, %v1384_v27  ;;  %v2014_v15 = vpop.eup %2013 }
 0xf4d   :  { %v1391_v29 = vadd.f32 1.4214138, %v1387_v25  ;;  %v1389_v46 = vmul.f32 %v2006_v24, %v1385_v34 }
 0xf4e   :  { %v1394_v31 = vmul.f32 %v2000_v10, %v1390_v40  ;;  %v1392_v44 = vadd.f32 1.4214138, %v1388_v33  ;;  %v1451_v40 = vmul.f32 0.5, %v2474_v57 }
 0xf4f   :  { %v1395_v35 = vmul.f32 %v2002_v12, %v1391_v29  ;;  %v1393_v51 = vadd.f32 1.4214138, %v1389_v46  ;;  %v1453_v29 = vmul.f32 0.5, %v2484_v43 }
 0xf50   :  { %v1398_v41 = vadd.f32 -0.28449672, %v1394_v31  ;;  %v1396_v50 = vmul.f32 %v2004_v17, %v1392_v44 }
 0xf51   :  { %v1399_v48 = vadd.f32 -0.28449672, %v1395_v35  ;;  %v1397_v62 = vmul.f32 %v2006_v24, %v1393_v51 }
 0xf52   :  { %v1402_v49 = vmul.f32 %v2000_v10, %v1398_v41  ;;  %v1400_v59 = vadd.f32 -0.28449672, %v1396_v50 }
 0xf53   :  { %v1403_v47 = vmul.f32 %v2002_v12, %v1399_v48  ;;  %v1401_v1 = vadd.f32 -0.28449672, %v1397_v62 }
 0xf54   :  { %v1406_v54 = vadd.f32 0.2548296, %v1402_v49  ;;  %v1404_v2 = vmul.f32 %v2004_v17, %v1400_v59 }
 0xf55   :  { %v1407_v42 = vadd.f32 0.2548296, %v1403_v47  ;;  %v1405_v6 = vmul.f32 %v2006_v24, %v1401_v1 }
 0xf56   :  { %v1410_v0 = vmul.f32 %v2000_v10, %v1406_v54  ;;  %v1408_v37 = vadd.f32 0.2548296, %v1404_v2 }
 0xf57   :  { %v1411_v5 = vmul.f32 %v2002_v12, %v1407_v42  ;;  %v1409_v58 = vadd.f32 0.2548296, %v1405_v6 }
 0xf58   :  { %v1430_v36 = vmul.f32 %v2008_v4, %v1410_v0  ;;  %v1412_v9 = vmul.f32 %v2004_v17, %v1408_v37  ;;  %v1450_v17 = vmul.f32 0.5, %v2472_v39 }
 0xf59   :  { %v1431_v7 = vmul.f32 %v2010_v32, %v1411_v5  ;;  %v1413_v22 = vmul.f32 %v2006_v24, %v1409_v58 }
 0xf5a   :  { %v1434_v8 = vsub.f32 1.0, %v1430_v36  ;;  %v1432_v14 = vmul.f32 %v2012_v11, %v1412_v9 }
 0xf5b   :  { %v1435_v56 = vsub.f32 1.0, %v1431_v7  ;;  %v1433_v12 = vmul.f32 %v2014_v15, %v1413_v22 }
 0xf5c   :  { %v1442_v13 = vsub.f32 0.0, %v1434_v8  ;;  %v1436_v18 = vsub.f32 1.0, %v1432_v14 }
 0xf5d   :  { %v1443_v10 = vsub.f32 0.0, %v1435_v56  ;;  %v1437_v53 = vsub.f32 1.0, %v1433_v12 }
 0xf5e   :  { %v1446_v16 = vsel %vm1438_vm7, %v1434_v8, %v1442_v13  ;;  %v1444_v20 = vsub.f32 0.0, %v1436_v18 }
 0xf5f   :  { %v1447_v19 = vsel %vm1439_vm8, %v1435_v56, %v1443_v10  ;;  %v1454_v21 = vadd.f32 1.0, %v1446_v16  ;;  %v1445_v25 = vsub.f32 0.0, %v1437_v53 }
 0xf60   :  { %v1448_v23 = vsel %vm1440_vm9, %v1436_v18, %v1444_v20  ;;  %v1455_v24 = vadd.f32 1.0, %v1447_v19 }
 0xf61   :  { %v1456_v60 = vadd.f32 1.0, %v1448_v23  ;;  %v1449_v27 = vsel %vm1441_vm10, %v1437_v53, %v1445_v25  ;;  %v1458_v63 = vmul.f32 %v1454_v21, %v1450_v17 }
 0xf62   :  { %v1457_v30 = vadd.f32 1.0, %v1449_v27  ;;  %v1459_v31 = vmul.f32 %v1455_v24, %v1451_v40 }
 0xf63   :  { %v1460_v28 = vmul.f32 %v1456_v60, %v1452_v26 }
 0xf64   :  { %v1461_v33 = vmul.f32 %v1457_v30, %v1453_v29 }
 0xf65   :  { %v1462_v45 = vpack.c.bf16 %v1460_v28, %v1458_v63 }
 0xf66   :  { %v1463_v39 = vpack.c.bf16 %v1461_v33, %v1459_v31 }
 0xf68   :  { %1630 = vmatprep.mubr.bf16.mxu0 %v1463_v39 }
 0xf69   :  { %1631 = vmatmul.mubr.bf16.vlgmr.msra.gmra.mrb[32].mxu0 %v1462_v45 }
0x103c   :  { %v1773_v34 = vpop.f32.mrb[32].mxu0 }
0x103d   :  { %v1774_v3 = vpop.f32.mrb[33].mxu0 }
0x103e   :  { %v1775_v35 = vadd.f32 %v1774_v3, %v1773_v34  ;;  %v1776_v57 = vpop.f32.mrb[34].mxu0 }
0x103f   :  { %v1777_v38 = vpop.f32.mrb[35].mxu0 }
0x1040   :  { %v1633_v41 = vadd.f32 %v1775_v35, %v1703_v61  ;;  %v1778_v44 = vadd.f32 %v1777_v38, %v1776_v57 }
0x1042   :  { %v1639_v43 = vadd.f32 %v1633_v41, %v2373_v52  ;;  %v1636_v46 = vadd.f32 %v1778_v44, %v1703_v61 }
0x1044   :  { %1641 = vst.msk [vmem:[#allocation2] sm:$0xff] %vm71_vm0, %v1639_v43  ;;  %v1640_v48 = vadd.f32 %v1636_v46, %v2376_v55 }
0x1046   :  { %1642 = vst.msk [vmem:[#allocation2 + $0x8] sm:$0xff] %vm71_vm0, %v1640_v48 }
0x1047   :  { %2026 = shalt.err (!%p2023_p4)
}
0x1048   :  { %s2027_s0 = scalar_lea.hbm %s2536_s13, 256 }
0x1049   :  { %p2028_p5 = scmp.ne.s32.totalorder %s2536_s13, %s2027_s0  ;;  %p2031_p6 = scmp.lt.u32.totalorder %s2027_s0, %s2536_s13 }
0x104b   :  { %p2033_p7 = pnand %p2031_p6, %p2028_p5 }
0x104d   :  { %2036 = shalt.err (!%p2033_p7)
}
0x104e   :  { %s2050_s30 = smov 128   ;;  %s2051_s14 = smov 8  }
0x104f   :  { %1654 = dma.vmem_to_hbm [thread:$0]  %s1649_s27, 256, %s2536_s13, [#allocation3], %s2050_s30, %s2050_s30, %s2051_s14  }
0x1050   :  { %2037 = dma.done.wait [#allocation3], 256  }
0x1051   :  { %2038 = vsyncadd [#allocation3], 4294967040 }
0x1052   :  { %1658 = vsyncpa [#allocation3], 1 }

</bundles_post_ra>
